<compile_context>
chip_gen: v7x
topology: tpu7x:2x2x1
jax: 0.10.0
libtpu: 0.0.40
codegen_flags: <defaults>
</compile_context>

<pallas_src>
import functools

import jax
import jax.numpy as jnp
from jax.experimental import pallas as pl
from jax.experimental.pallas import tpu as pltpu


# ----------------------------------------------------------------------------
# Single fused Pallas kernel for the whole PixelCNN forward
# ----------------------------------------------------------------------------
def _pixelcnn_kernel(
    xs_ref,       # (BL, Cin)        causally shifted input (left tap of mask 'A')
    cond_ref,     # (BL, D)          condition embedding, channels-last rows
    s_ref,        # (BL, BL)         causal shift matrix for hidden activations
    a_w_ref,      # (Cin, 2H)        'A' layer masked-conv left-tap weights [input | gate]
    a_bns_ref,    # (1, H)           folded BatchNorm scale  ('A' layer)
    a_bnb_ref,    # (1, H)           folded BatchNorm shift  ('A' layer)
    wl_ref,       # (NL, H, 2H)      'B' layers left-tap weights   [input | gate]
    wc_ref,       # (NL, H, 2H)      'B' layers center-tap weights [input | gate]
    bns_ref,      # (NL, 1, H)       folded BatchNorm scales
    bnb_ref,      # (NL, 1, H)       folded BatchNorm shifts
    cw_ref,       # (D, (NL+1)*2H)   all condition 1x1-conv weights (chunk 0 = 'A')
    cb_ref,       # (1, (NL+1)*2H)   all condition 1x1-conv biases
    ow_ref,       # (H, NE)          output 1x1 conv weight
    ob_ref,       # (1, NE)          output 1x1 conv bias
    o_ref,        # (BL, NE)
    *, num_layers, hidden):
    f32 = jnp.float32
    H = hidden

    xs = xs_ref[...]        # (BL, Cin)
    cond = cond_ref[...]    # (BL, D)
    S = s_ref[...]          # (BL, BL)

    # All condition 1x1 convs (every layer) in one MXU matmul, sliced per layer.
    cpre = jnp.dot(cond, cw_ref[...], preferred_element_type=f32) + cb_ref[...]

    def gate(pre):          # pre: (BL, 2H) -> (BL, H)
        return jnp.tanh(pre[:, :H]) * jax.nn.sigmoid(pre[:, H:])

    # ---- input layer: ConditionedGatedMaskedConv1d('A') + folded BatchNorm1d ----
    if xs.shape[1] == 1:    # input_channels == 1: broadcast-mul instead of K=1 matmul
        mc = xs * a_w_ref[...]
    else:
        mc = jnp.dot(xs, a_w_ref[...], preferred_element_type=f32)
    h = gate(mc + cpre[:, 0:2 * H])
    h = h * a_bns_ref[...] + a_bnb_ref[...]

    residual = h
    # ---- num_layers x [ConditionedGatedMaskedConv1d('B') + BN], residual per pair ----
    for l in range(num_layers):                       # fully unrolled, all VMEM resident
        hs = jnp.dot(S, h, preferred_element_type=f32)          # causal shift: h[t-1]
        pre = (jnp.dot(hs, wl_ref[l], preferred_element_type=f32)
               + jnp.dot(h, wc_ref[l], preferred_element_type=f32)
               + cpre[:, (l + 1) * 2 * H:(l + 2) * 2 * H])
        g = gate(pre)
        g = g * bns_ref[l] + bnb_ref[l]               # folded BatchNorm1d
        h = g + residual                              # x += residual
        residual = h                                  # residual = x

    # ---- output_layer: Conv1d(H, num_embeddings, k=1) ----
    out = jnp.dot(h, ow_ref[...], preferred_element_type=f32) + ob_ref[...]
    o_ref[...] = out.astype(o_ref.dtype)              # (BL, 128) lane-dense store


# ----------------------------------------------------------------------------
# Wrapper (layout plumbing only; all compute is inside the single kernel)
# ----------------------------------------------------------------------------
def pixelcnn_forward(x, cond, p):
    """x: (B, Cin, L) NCL, cond: (B, D, L) NCL -> (B, num_embeddings, L) like PyTorch."""
    B, Cin, L = x.shape
    D = cond.shape[1]
    H = p["hidden_channels"]
    NE = p["num_embeddings"]
    NL = p["num_layers"]
    BL = B * L

    # channels-last rows
    x_cl = jnp.transpose(x, (0, 2, 1))                           # (B, L, Cin)
    x_shift = jnp.concatenate([jnp.zeros_like(x_cl[:, :1]), x_cl[:, :-1]], axis=1)
    x_shift2d = x_shift.reshape(BL, Cin)
    cond2d = jnp.transpose(cond, (0, 2, 1)).reshape(BL, D)

    # causal shift matrix: (S @ h)[r] = h[r-1], zero at the first position of each sequence
    r = jnp.arange(BL)
    S = ((r[:, None] - 1 == r[None, :]) & (r[:, None] % L != 0)).astype(jnp.float32)

    # ---- pack weights (input branch | gate branch side by side) ----
    a_w = jnp.concatenate([p["a_w1"], p["a_w2"]], axis=1)        # (Cin, 2H)
    wl = jnp.concatenate([p["w1l"], p["w2l"]], axis=2)           # (NL, H, 2H)
    wc = jnp.concatenate([p["w1c"], p["w2c"]], axis=2)           # (NL, H, 2H)
    # condition 1x1 convs: chunk 0 = 'A' layer, chunks 1..NL = 'B' layers
    cw_a = jnp.concatenate([p["a_c1w"], p["a_c2w"]], axis=1)     # (D, 2H)
    cb_a = jnp.concatenate([p["a_c1b"], p["a_c2b"]], axis=1)     # (1, 2H)
    cw_b = jnp.concatenate([p["c1w"], p["c2w"]], axis=2)         # (NL, D, 2H)
    cb_b = jnp.concatenate([p["c1b"], p["c2b"]], axis=2)         # (NL, 1, 2H)
    cw = jnp.concatenate([cw_a] + [cw_b[l] for l in range(NL)], axis=1)  # (D, (NL+1)*2H)
    cb = jnp.concatenate([cb_a] + [cb_b[l] for l in range(NL)], axis=1)  # (1, (NL+1)*2H)

    operands = (
        x_shift2d, cond2d, S,
        a_w, p["a_bn_s"], p["a_bn_b"],
        wl, wc, p["bn_s"], p["bn_b"],
        cw, cb,
        p["out_w"], p["out_b"],
    )

    def _full_spec(a):
        return pl.BlockSpec(a.shape, lambda i, _r=a.ndim: (0,) * _r)

    out2d = pl.pallas_call(
        functools.partial(_pixelcnn_kernel, num_layers=NL, hidden=H),
        out_shape=jax.ShapeDtypeStruct((BL, NE), jnp.float32),
        grid=(1,),
        in_specs=[_full_spec(a) for a in operands],
        out_specs=pl.BlockSpec((BL, NE), lambda i: (0, 0)),
        compiler_params=pltpu.CompilerParams(dimension_semantics=("arbitrary",)),
    )(*operands)

    # back to PyTorch NCL layout (B, num_embeddings, L)
    return jnp.transpose(out2d.reshape(B, L, NE), (0, 2, 1))


# ----------------------------------------------------------------------------
# Deterministic synthetic parameters (weights already masked / BN folded)
# ----------------------------------------------------------------------------
def init_params(key, *, input_channels=1, hidden_channels=32, cond_dim=16,
                num_layers=4, num_embeddings=128):
    keys = iter(jax.random.split(key, 128))
    nxt = lambda: next(keys)

    def w(shape, fan_in):
        return jax.random.normal(nxt(), shape, jnp.float32) / jnp.sqrt(float(fan_in))

    def bn_folded(c):
        gamma = 1.0 + 0.1 * jax.random.normal(nxt(), (c,), jnp.float32)
        beta = 0.1 * jax.random.normal(nxt(), (c,), jnp.float32)
        mean = 0.1 * jax.random.normal(nxt(), (c,), jnp.float32)
        var = 1.0 + 0.1 * jnp.abs(jax.random.normal(nxt(), (c,), jnp.float32))
        scale = gamma / jnp.sqrt(var + 1e-5)
        shift = beta - mean * scale
        return scale.reshape(1, c), shift.reshape(1, c)

    Cin, H, D, NL, NE = input_channels, hidden_channels, cond_dim, num_layers, num_embeddings
    p = {"input_channels": Cin, "hidden_channels": H, "cond_dim": D,
         "num_layers": NL, "num_embeddings": NE}

    # input layer: mask 'A' keeps only the left tap; masked convs have bias=False
    p["a_w1"] = w((Cin, H), Cin * 3)
    p["a_w2"] = w((Cin, H), Cin * 3)
    p["a_c1w"] = w((D, H), D)
    p["a_c1b"] = 0.01 * jax.random.normal(nxt(), (1, H), jnp.float32)
    p["a_c2w"] = w((D, H), D)
    p["a_c2b"] = 0.01 * jax.random.normal(nxt(), (1, H), jnp.float32)
    p["a_bn_s"], p["a_bn_b"] = bn_folded(H)

    # 'B' layers: mask 'B' keeps left + center taps
    p["w1l"] = w((NL, H, H), H * 3)
    p["w1c"] = w((NL, H, H), H * 3)
    p["w2l"] = w((NL, H, H), H * 3)
    p["w2c"] = w((NL, H, H), H * 3)
    p["c1w"] = w((NL, D, H), D)
    p["c1b"] = 0.01 * jax.random.normal(nxt(), (NL, 1, H), jnp.float32)
    p["c2w"] = w((NL, D, H), D)
    p["c2b"] = 0.01 * jax.random.normal(nxt(), (NL, 1, H), jnp.float32)
    bns, bnb = [], []
    for _ in range(NL):
        s, b = bn_folded(H)
        bns.append(s)
        bnb.append(b)
    p["bn_s"] = jnp.stack(bns)        # (NL, 1, H)
    p["bn_b"] = jnp.stack(bnb)

    p["out_w"] = w((H, NE), H)
    p["out_b"] = 0.01 * jax.random.normal(nxt(), (1, NE), jnp.float32)
    return p


# ----------------------------------------------------------------------------
# Pure-JAX reference (same math, unpacked weights, no Pallas) for a sanity check
# ----------------------------------------------------------------------------
def pixelcnn_reference(x, cond, p):
    NL = p["num_layers"]
    x_cl = jnp.transpose(x, (0, 2, 1))       # (B, L, Cin)
    c_cl = jnp.transpose(cond, (0, 2, 1))    # (B, L, D)

    def shift(a):  # causal shift along L
        return jnp.concatenate([jnp.zeros_like(a[:, :1]), a[:, :-1]], axis=1)

    xs = shift(x_cl)
    h = (jnp.tanh(xs @ p["a_w1"] + c_cl @ p["a_c1w"] + p["a_c1b"])
         * jax.nn.sigmoid(xs @ p["a_w2"] + c_cl @ p["a_c2w"] + p["a_c2b"]))
    h = h * p["a_bn_s"] + p["a_bn_b"]
    residual = h
    for l in range(NL):
        hs = shift(h)
        pre1 = hs @ p["w1l"][l] + h @ p["w1c"][l] + c_cl @ p["c1w"][l] + p["c1b"][l]
        pre2 = hs @ p["w2l"][l] + h @ p["w2c"][l] + c_cl @ p["c2w"][l] + p["c2b"][l]
        g = jnp.tanh(pre1) * jax.nn.sigmoid(pre2)
        g = g * p["bn_s"][l] + p["bn_b"][l]
        h = g + residual
        residual = h
    out = h @ p["out_w"] + p["out_b"]
    return jnp.transpose(out, (0, 2, 1))     # (B, NE, L)


# ----------------------------------------------------------------------------
if __name__ == "__main__":
    key = jax.random.PRNGKey(0)
    kp, kx, kc = jax.random.split(key, 3)

    B, L = 2, 16
    CIN, HID, COND, NLAYERS, NEMB = 1, 32, 16, 4, 128

    params = init_params(kp, input_channels=CIN, hidden_channels=HID,
                         cond_dim=COND, num_layers=NLAYERS, num_embeddings=NEMB)
    x = jax.random.normal(kx, (B, CIN, L), jnp.float32)          # (B, 1, L) NCL
    cond = jax.random.normal(kc, (B, COND, L), jnp.float32)      # (B, D, L) NCL

    out = pixelcnn_forward(x, cond, params)
    out = jax.block_until_ready(out)
    assert out.shape == (B, NEMB, L), out.shape
    assert bool(jnp.all(jnp.isfinite(out)))

    ref = pixelcnn_reference(x, cond, params)
    max_diff = float(jnp.max(jnp.abs(out - ref)))
    tol = 5e-2 * (1.0 + float(jnp.max(jnp.abs(ref))))   # matmul-precision only
    assert max_diff < tol, (max_diff, tol)

    print("KERNEL_OK")
</pallas_src>

<mosaic_0001>
module attributes {stable_mosaic.version = 11 : i64} {
  func.func @_pixelcnn_kernel(%arg0: i32, %arg1: memref<32x1xf32, #tpu.memory_space<vmem>>, %arg2: memref<32x16xf32, #tpu.memory_space<vmem>>, %arg3: memref<32x32xf32, #tpu.memory_space<vmem>>, %arg4: memref<1x64xf32, #tpu.memory_space<vmem>>, %arg5: memref<1x32xf32, #tpu.memory_space<vmem>>, %arg6: memref<1x32xf32, #tpu.memory_space<vmem>>, %arg7: memref<4x32x64xf32, #tpu.memory_space<vmem>>, %arg8: memref<4x32x64xf32, #tpu.memory_space<vmem>>, %arg9: memref<4x1x32xf32, #tpu.memory_space<vmem>>, %arg10: memref<4x1x32xf32, #tpu.memory_space<vmem>>, %arg11: memref<16x320xf32, #tpu.memory_space<vmem>>, %arg12: memref<1x320xf32, #tpu.memory_space<vmem>>, %arg13: memref<32x128xf32, #tpu.memory_space<vmem>>, %arg14: memref<1x128xf32, #tpu.memory_space<vmem>>, %arg15: memref<32x128xf32, #tpu.memory_space<vmem>>) attributes {dimension_semantics = [#tpu.dimension_semantics<arbitrary>], iteration_bounds = array<i64: 1>, scalar_prefetch = 0 : i64, scratch_operands = 0 : i64, tpu.core_type = #tpu.core_type<tc>, window_params = [{pipeline_mode = #tpu.pipeline_mode<synchronous>, transform_indices = @transform_0, window_bounds = array<i64: 32, 1>}, {pipeline_mode = #tpu.pipeline_mode<synchronous>, transform_indices = @transform_1, window_bounds = array<i64: 32, 16>}, {pipeline_mode = #tpu.pipeline_mode<synchronous>, transform_indices = @transform_2, window_bounds = array<i64: 32, 32>}, {pipeline_mode = #tpu.pipeline_mode<synchronous>, transform_indices = @transform_3, window_bounds = array<i64: 1, 64>}, {pipeline_mode = #tpu.pipeline_mode<synchronous>, transform_indices = @transform_4, window_bounds = array<i64: 1, 32>}, {pipeline_mode = #tpu.pipeline_mode<synchronous>, transform_indices = @transform_5, window_bounds = array<i64: 1, 32>}, {pipeline_mode = #tpu.pipeline_mode<synchronous>, transform_indices = @transform_6, window_bounds = array<i64: 4, 32, 64>}, {pipeline_mode = #tpu.pipeline_mode<synchronous>, transform_indices = @transform_7, window_bounds = array<i64: 4, 32, 64>}, {pipeline_mode = #tpu.pipeline_mode<synchronous>, transform_indices = @transform_8, window_bounds = array<i64: 4, 1, 32>}, {pipeline_mode = #tpu.pipeline_mode<synchronous>, transform_indices = @transform_9, window_bounds = array<i64: 4, 1, 32>}, {pipeline_mode = #tpu.pipeline_mode<synchronous>, transform_indices = @transform_10, window_bounds = array<i64: 16, 320>}, {pipeline_mode = #tpu.pipeline_mode<synchronous>, transform_indices = @transform_11, window_bounds = array<i64: 1, 320>}, {pipeline_mode = #tpu.pipeline_mode<synchronous>, transform_indices = @transform_12, window_bounds = array<i64: 32, 128>}, {pipeline_mode = #tpu.pipeline_mode<synchronous>, transform_indices = @transform_13, window_bounds = array<i64: 1, 128>}, {pipeline_mode = #tpu.pipeline_mode<synchronous>, transform_indices = @transform_14, window_bounds = array<i64: 32, 128>}]} {
    %c0 = arith.constant 0 : index
    %c0_0 = arith.constant 0 : index
    %0 = vector.load %arg1[%c0, %c0_0] : memref<32x1xf32, #tpu.memory_space<vmem>>, vector<32x1xf32>
    %c0_1 = arith.constant 0 : index
    %c0_2 = arith.constant 0 : index
    %1 = vector.load %arg2[%c0_1, %c0_2] : memref<32x16xf32, #tpu.memory_space<vmem>>, vector<32x16xf32>
    %c0_3 = arith.constant 0 : index
    %c0_4 = arith.constant 0 : index
    %2 = vector.load %arg3[%c0_3, %c0_4] : memref<32x32xf32, #tpu.memory_space<vmem>>, vector<32x32xf32>
    %c0_5 = arith.constant 0 : index
    %c0_6 = arith.constant 0 : index
    %3 = vector.load %arg11[%c0_5, %c0_6] : memref<16x320xf32, #tpu.memory_space<vmem>>, vector<16x320xf32>
    %cst = arith.constant dense<0.000000e+00> : vector<32x320xf32>
    %4 = tpu.matmul %1, %3, %cst {dimension_numbers = #tpu.dot_dimension_numbers<[1], [0], [0], [1], [0, 0, 1, 1], [], []>} : vector<32x16xf32>, vector<16x320xf32>, vector<32x320xf32> -> vector<32x320xf32>
    %c0_7 = arith.constant 0 : index
    %c0_8 = arith.constant 0 : index
    %5 = vector.load %arg12[%c0_7, %c0_8] : memref<1x320xf32, #tpu.memory_space<vmem>>, vector<1x320xf32>
    %6 = vector.broadcast %5 : vector<1x320xf32> to vector<32x320xf32>
    %7 = arith.addf %4, %6 : vector<32x320xf32>
    %c0_9 = arith.constant 0 : index
    %c0_10 = arith.constant 0 : index
    %8 = vector.load %arg4[%c0_9, %c0_10] : memref<1x64xf32, #tpu.memory_space<vmem>>, vector<1x64xf32>
    %9 = vector.broadcast %0 : vector<32x1xf32> to vector<32x64xf32>
    %10 = vector.broadcast %8 : vector<1x64xf32> to vector<32x64xf32>
    %11 = arith.mulf %9, %10 : vector<32x64xf32>
    %12 = vector.extract_strided_slice %7 {offsets = [0, 0], sizes = [32, 64], strides = [1, 1]} : vector<32x320xf32> to vector<32x64xf32>
    %13 = arith.addf %11, %12 : vector<32x64xf32>
    %14 = vector.extract_strided_slice %13 {offsets = [0, 0], sizes = [32, 32], strides = [1, 1]} : vector<32x64xf32> to vector<32x32xf32>
    %15 = math.tanh %14 : vector<32x32xf32>
    %16 = vector.extract_strided_slice %13 {offsets = [0, 32], sizes = [32, 32], strides = [1, 1]} : vector<32x64xf32> to vector<32x32xf32>
    %17 = arith.negf %16 : vector<32x32xf32>
    %18 = math.exp %17 : vector<32x32xf32>
    %cst_11 = arith.constant 1.000000e+00 : f32
    %19 = vector.broadcast %cst_11 : f32 to vector<32x32xf32>
    %20 = arith.addf %19, %18 : vector<32x32xf32>
    %21 = arith.divf %19, %20 : vector<32x32xf32>
    %22 = arith.mulf %15, %21 : vector<32x32xf32>
    %c0_12 = arith.constant 0 : index
    %c0_13 = arith.constant 0 : index
    %23 = vector.load %arg5[%c0_12, %c0_13] : memref<1x32xf32, #tpu.memory_space<vmem>>, vector<1x32xf32>
    %24 = vector.broadcast %23 : vector<1x32xf32> to vector<32x32xf32>
    %25 = arith.mulf %22, %24 : vector<32x32xf32>
    %c0_14 = arith.constant 0 : index
    %c0_15 = arith.constant 0 : index
    %26 = vector.load %arg6[%c0_14, %c0_15] : memref<1x32xf32, #tpu.memory_space<vmem>>, vector<1x32xf32>
    %27 = vector.broadcast %26 : vector<1x32xf32> to vector<32x32xf32>
    %28 = arith.addf %25, %27 : vector<32x32xf32>
    %cst_16 = arith.constant dense<0.000000e+00> : vector<32x32xf32>
    %29 = tpu.matmul %2, %28, %cst_16 {dimension_numbers = #tpu.dot_dimension_numbers<[1], [0], [0], [1], [0, 0, 1, 1], [], []>} : vector<32x32xf32>, vector<32x32xf32>, vector<32x32xf32> -> vector<32x32xf32>
    %c0_17 = arith.constant 0 : index
    %c0_18 = arith.constant 0 : index
    %c0_19 = arith.constant 0 : index
    %30 = vector.load %arg7[%c0_17, %c0_18, %c0_19] : memref<4x32x64xf32, #tpu.memory_space<vmem>>, vector<1x32x64xf32>
    %31 = vector.shape_cast %30 : vector<1x32x64xf32> to vector<32x64xf32>
    %cst_20 = arith.constant dense<0.000000e+00> : vector<32x64xf32>
    %32 = tpu.matmul %29, %31, %cst_20 {dimension_numbers = #tpu.dot_dimension_numbers<[1], [0], [0], [1], [0, 0, 1, 1], [], []>} : vector<32x32xf32>, vector<32x64xf32>, vector<32x64xf32> -> vector<32x64xf32>
    %c0_21 = arith.constant 0 : index
    %c0_22 = arith.constant 0 : index
    %c0_23 = arith.constant 0 : index
    %33 = vector.load %arg8[%c0_21, %c0_22, %c0_23] : memref<4x32x64xf32, #tpu.memory_space<vmem>>, vector<1x32x64xf32>
    %34 = vector.shape_cast %33 : vector<1x32x64xf32> to vector<32x64xf32>
    %cst_24 = arith.constant dense<0.000000e+00> : vector<32x64xf32>
    %35 = tpu.matmul %28, %34, %cst_24 {dimension_numbers = #tpu.dot_dimension_numbers<[1], [0], [0], [1], [0, 0, 1, 1], [], []>} : vector<32x32xf32>, vector<32x64xf32>, vector<32x64xf32> -> vector<32x64xf32>
    %36 = arith.addf %32, %35 : vector<32x64xf32>
    %37 = vector.extract_strided_slice %7 {offsets = [0, 64], sizes = [32, 64], strides = [1, 1]} : vector<32x320xf32> to vector<32x64xf32>
    %38 = arith.addf %36, %37 : vector<32x64xf32>
    %39 = vector.extract_strided_slice %38 {offsets = [0, 0], sizes = [32, 32], strides = [1, 1]} : vector<32x64xf32> to vector<32x32xf32>
    %40 = math.tanh %39 : vector<32x32xf32>
    %41 = vector.extract_strided_slice %38 {offsets = [0, 32], sizes = [32, 32], strides = [1, 1]} : vector<32x64xf32> to vector<32x32xf32>
    %42 = arith.negf %41 : vector<32x32xf32>
    %43 = math.exp %42 : vector<32x32xf32>
    %cst_25 = arith.constant 1.000000e+00 : f32
    %44 = vector.broadcast %cst_25 : f32 to vector<32x32xf32>
    %45 = arith.addf %44, %43 : vector<32x32xf32>
    %46 = arith.divf %44, %45 : vector<32x32xf32>
    %47 = arith.mulf %40, %46 : vector<32x32xf32>
    %c0_26 = arith.constant 0 : index
    %c0_27 = arith.constant 0 : index
    %c0_28 = arith.constant 0 : index
    %48 = vector.load %arg9[%c0_26, %c0_27, %c0_28] : memref<4x1x32xf32, #tpu.memory_space<vmem>>, vector<1x1x32xf32>
    %49 = vector.shape_cast %48 : vector<1x1x32xf32> to vector<1x32xf32>
    %50 = vector.broadcast %49 : vector<1x32xf32> to vector<32x32xf32>
    %51 = arith.mulf %47, %50 : vector<32x32xf32>
    %c0_29 = arith.constant 0 : index
    %c0_30 = arith.constant 0 : index
    %c0_31 = arith.constant 0 : index
    %52 = vector.load %arg10[%c0_29, %c0_30, %c0_31] : memref<4x1x32xf32, #tpu.memory_space<vmem>>, vector<1x1x32xf32>
    %53 = vector.shape_cast %52 : vector<1x1x32xf32> to vector<1x32xf32>
    %54 = vector.broadcast %53 : vector<1x32xf32> to vector<32x32xf32>
    %55 = arith.addf %51, %54 : vector<32x32xf32>
    %56 = arith.addf %55, %28 : vector<32x32xf32>
    %cst_32 = arith.constant dense<0.000000e+00> : vector<32x32xf32>
    %57 = tpu.matmul %2, %56, %cst_32 {dimension_numbers = #tpu.dot_dimension_numbers<[1], [0], [0], [1], [0, 0, 1, 1], [], []>} : vector<32x32xf32>, vector<32x32xf32>, vector<32x32xf32> -> vector<32x32xf32>
    %c1 = arith.constant 1 : index
    %c0_33 = arith.constant 0 : index
    %c0_34 = arith.constant 0 : index
    %58 = vector.load %arg7[%c1, %c0_33, %c0_34] : memref<4x32x64xf32, #tpu.memory_space<vmem>>, vector<1x32x64xf32>
    %59 = vector.shape_cast %58 : vector<1x32x64xf32> to vector<32x64xf32>
    %cst_35 = arith.constant dense<0.000000e+00> : vector<32x64xf32>
    %60 = tpu.matmul %57, %59, %cst_35 {dimension_numbers = #tpu.dot_dimension_numbers<[1], [0], [0], [1], [0, 0, 1, 1], [], []>} : vector<32x32xf32>, vector<32x64xf32>, vector<32x64xf32> -> vector<32x64xf32>
    %c1_36 = arith.constant 1 : index
    %c0_37 = arith.constant 0 : index
    %c0_38 = arith.constant 0 : index
    %61 = vector.load %arg8[%c1_36, %c0_37, %c0_38] : memref<4x32x64xf32, #tpu.memory_space<vmem>>, vector<1x32x64xf32>
    %62 = vector.shape_cast %61 : vector<1x32x64xf32> to vector<32x64xf32>
    %cst_39 = arith.constant dense<0.000000e+00> : vector<32x64xf32>
    %63 = tpu.matmul %56, %62, %cst_39 {dimension_numbers = #tpu.dot_dimension_numbers<[1], [0], [0], [1], [0, 0, 1, 1], [], []>} : vector<32x32xf32>, vector<32x64xf32>, vector<32x64xf32> -> vector<32x64xf32>
    %64 = arith.addf %60, %63 : vector<32x64xf32>
    %65 = vector.extract_strided_slice %7 {offsets = [0, 128], sizes = [32, 64], strides = [1, 1]} : vector<32x320xf32> to vector<32x64xf32>
    %66 = arith.addf %64, %65 : vector<32x64xf32>
    %67 = vector.extract_strided_slice %66 {offsets = [0, 0], sizes = [32, 32], strides = [1, 1]} : vector<32x64xf32> to vector<32x32xf32>
    %68 = math.tanh %67 : vector<32x32xf32>
    %69 = vector.extract_strided_slice %66 {offsets = [0, 32], sizes = [32, 32], strides = [1, 1]} : vector<32x64xf32> to vector<32x32xf32>
    %70 = arith.negf %69 : vector<32x32xf32>
    %71 = math.exp %70 : vector<32x32xf32>
    %cst_40 = arith.constant 1.000000e+00 : f32
    %72 = vector.broadcast %cst_40 : f32 to vector<32x32xf32>
    %73 = arith.addf %72, %71 : vector<32x32xf32>
    %74 = arith.divf %72, %73 : vector<32x32xf32>
    %75 = arith.mulf %68, %74 : vector<32x32xf32>
    %c1_41 = arith.constant 1 : index
    %c0_42 = arith.constant 0 : index
    %c0_43 = arith.constant 0 : index
    %76 = vector.load %arg9[%c1_41, %c0_42, %c0_43] : memref<4x1x32xf32, #tpu.memory_space<vmem>>, vector<1x1x32xf32>
    %77 = vector.shape_cast %76 : vector<1x1x32xf32> to vector<1x32xf32>
    %78 = vector.broadcast %77 : vector<1x32xf32> to vector<32x32xf32>
    %79 = arith.mulf %75, %78 : vector<32x32xf32>
    %c1_44 = arith.constant 1 : index
    %c0_45 = arith.constant 0 : index
    %c0_46 = arith.constant 0 : index
    %80 = vector.load %arg10[%c1_44, %c0_45, %c0_46] : memref<4x1x32xf32, #tpu.memory_space<vmem>>, vector<1x1x32xf32>
    %81 = vector.shape_cast %80 : vector<1x1x32xf32> to vector<1x32xf32>
    %82 = vector.broadcast %81 : vector<1x32xf32> to vector<32x32xf32>
    %83 = arith.addf %79, %82 : vector<32x32xf32>
    %84 = arith.addf %83, %56 : vector<32x32xf32>
    %cst_47 = arith.constant dense<0.000000e+00> : vector<32x32xf32>
    %85 = tpu.matmul %2, %84, %cst_47 {dimension_numbers = #tpu.dot_dimension_numbers<[1], [0], [0], [1], [0, 0, 1, 1], [], []>} : vector<32x32xf32>, vector<32x32xf32>, vector<32x32xf32> -> vector<32x32xf32>
    %c2 = arith.constant 2 : index
    %c0_48 = arith.constant 0 : index
    %c0_49 = arith.constant 0 : index
    %86 = vector.load %arg7[%c2, %c0_48, %c0_49] : memref<4x32x64xf32, #tpu.memory_space<vmem>>, vector<1x32x64xf32>
    %87 = vector.shape_cast %86 : vector<1x32x64xf32> to vector<32x64xf32>
    %cst_50 = arith.constant dense<0.000000e+00> : vector<32x64xf32>
    %88 = tpu.matmul %85, %87, %cst_50 {dimension_numbers = #tpu.dot_dimension_numbers<[1], [0], [0], [1], [0, 0, 1, 1], [], []>} : vector<32x32xf32>, vector<32x64xf32>, vector<32x64xf32> -> vector<32x64xf32>
    %c2_51 = arith.constant 2 : index
    %c0_52 = arith.constant 0 : index
    %c0_53 = arith.constant 0 : index
    %89 = vector.load %arg8[%c2_51, %c0_52, %c0_53] : memref<4x32x64xf32, #tpu.memory_space<vmem>>, vector<1x32x64xf32>
    %90 = vector.shape_cast %89 : vector<1x32x64xf32> to vector<32x64xf32>
    %cst_54 = arith.constant dense<0.000000e+00> : vector<32x64xf32>
    %91 = tpu.matmul %84, %90, %cst_54 {dimension_numbers = #tpu.dot_dimension_numbers<[1], [0], [0], [1], [0, 0, 1, 1], [], []>} : vector<32x32xf32>, vector<32x64xf32>, vector<32x64xf32> -> vector<32x64xf32>
    %92 = arith.addf %88, %91 : vector<32x64xf32>
    %93 = vector.extract_strided_slice %7 {offsets = [0, 192], sizes = [32, 64], strides = [1, 1]} : vector<32x320xf32> to vector<32x64xf32>
    %94 = arith.addf %92, %93 : vector<32x64xf32>
    %95 = vector.extract_strided_slice %94 {offsets = [0, 0], sizes = [32, 32], strides = [1, 1]} : vector<32x64xf32> to vector<32x32xf32>
    %96 = math.tanh %95 : vector<32x32xf32>
    %97 = vector.extract_strided_slice %94 {offsets = [0, 32], sizes = [32, 32], strides = [1, 1]} : vector<32x64xf32> to vector<32x32xf32>
    %98 = arith.negf %97 : vector<32x32xf32>
    %99 = math.exp %98 : vector<32x32xf32>
    %cst_55 = arith.constant 1.000000e+00 : f32
    %100 = vector.broadcast %cst_55 : f32 to vector<32x32xf32>
    %101 = arith.addf %100, %99 : vector<32x32xf32>
    %102 = arith.divf %100, %101 : vector<32x32xf32>
    %103 = arith.mulf %96, %102 : vector<32x32xf32>
    %c2_56 = arith.constant 2 : index
    %c0_57 = arith.constant 0 : index
    %c0_58 = arith.constant 0 : index
    %104 = vector.load %arg9[%c2_56, %c0_57, %c0_58] : memref<4x1x32xf32, #tpu.memory_space<vmem>>, vector<1x1x32xf32>
    %105 = vector.shape_cast %104 : vector<1x1x32xf32> to vector<1x32xf32>
    %106 = vector.broadcast %105 : vector<1x32xf32> to vector<32x32xf32>
    %107 = arith.mulf %103, %106 : vector<32x32xf32>
    %c2_59 = arith.constant 2 : index
    %c0_60 = arith.constant 0 : index
    %c0_61 = arith.constant 0 : index
    %108 = vector.load %arg10[%c2_59, %c0_60, %c0_61] : memref<4x1x32xf32, #tpu.memory_space<vmem>>, vector<1x1x32xf32>
    %109 = vector.shape_cast %108 : vector<1x1x32xf32> to vector<1x32xf32>
    %110 = vector.broadcast %109 : vector<1x32xf32> to vector<32x32xf32>
    %111 = arith.addf %107, %110 : vector<32x32xf32>
    %112 = arith.addf %111, %84 : vector<32x32xf32>
    %cst_62 = arith.constant dense<0.000000e+00> : vector<32x32xf32>
    %113 = tpu.matmul %2, %112, %cst_62 {dimension_numbers = #tpu.dot_dimension_numbers<[1], [0], [0], [1], [0, 0, 1, 1], [], []>} : vector<32x32xf32>, vector<32x32xf32>, vector<32x32xf32> -> vector<32x32xf32>
    %c3 = arith.constant 3 : index
    %c0_63 = arith.constant 0 : index
    %c0_64 = arith.constant 0 : index
    %114 = vector.load %arg7[%c3, %c0_63, %c0_64] : memref<4x32x64xf32, #tpu.memory_space<vmem>>, vector<1x32x64xf32>
    %115 = vector.shape_cast %114 : vector<1x32x64xf32> to vector<32x64xf32>
    %cst_65 = arith.constant dense<0.000000e+00> : vector<32x64xf32>
    %116 = tpu.matmul %113, %115, %cst_65 {dimension_numbers = #tpu.dot_dimension_numbers<[1], [0], [0], [1], [0, 0, 1, 1], [], []>} : vector<32x32xf32>, vector<32x64xf32>, vector<32x64xf32> -> vector<32x64xf32>
    %c3_66 = arith.constant 3 : index
    %c0_67 = arith.constant 0 : index
    %c0_68 = arith.constant 0 : index
    %117 = vector.load %arg8[%c3_66, %c0_67, %c0_68] : memref<4x32x64xf32, #tpu.memory_space<vmem>>, vector<1x32x64xf32>
    %118 = vector.shape_cast %117 : vector<1x32x64xf32> to vector<32x64xf32>
    %cst_69 = arith.constant dense<0.000000e+00> : vector<32x64xf32>
    %119 = tpu.matmul %112, %118, %cst_69 {dimension_numbers = #tpu.dot_dimension_numbers<[1], [0], [0], [1], [0, 0, 1, 1], [], []>} : vector<32x32xf32>, vector<32x64xf32>, vector<32x64xf32> -> vector<32x64xf32>
    %120 = arith.addf %116, %119 : vector<32x64xf32>
    %121 = vector.extract_strided_slice %7 {offsets = [0, 256], sizes = [32, 64], strides = [1, 1]} : vector<32x320xf32> to vector<32x64xf32>
    %122 = arith.addf %120, %121 : vector<32x64xf32>
    %123 = vector.extract_strided_slice %122 {offsets = [0, 0], sizes = [32, 32], strides = [1, 1]} : vector<32x64xf32> to vector<32x32xf32>
    %124 = math.tanh %123 : vector<32x32xf32>
    %125 = vector.extract_strided_slice %122 {offsets = [0, 32], sizes = [32, 32], strides = [1, 1]} : vector<32x64xf32> to vector<32x32xf32>
    %126 = arith.negf %125 : vector<32x32xf32>
    %127 = math.exp %126 : vector<32x32xf32>
    %cst_70 = arith.constant 1.000000e+00 : f32
    %128 = vector.broadcast %cst_70 : f32 to vector<32x32xf32>
    %129 = arith.addf %128, %127 : vector<32x32xf32>
    %130 = arith.divf %128, %129 : vector<32x32xf32>
    %131 = arith.mulf %124, %130 : vector<32x32xf32>
    %c3_71 = arith.constant 3 : index
    %c0_72 = arith.constant 0 : index
    %c0_73 = arith.constant 0 : index
    %132 = vector.load %arg9[%c3_71, %c0_72, %c0_73] : memref<4x1x32xf32, #tpu.memory_space<vmem>>, vector<1x1x32xf32>
    %133 = vector.shape_cast %132 : vector<1x1x32xf32> to vector<1x32xf32>
    %134 = vector.broadcast %133 : vector<1x32xf32> to vector<32x32xf32>
    %135 = arith.mulf %131, %134 : vector<32x32xf32>
    %c3_74 = arith.constant 3 : index
    %c0_75 = arith.constant 0 : index
    %c0_76 = arith.constant 0 : index
    %136 = vector.load %arg10[%c3_74, %c0_75, %c0_76] : memref<4x1x32xf32, #tpu.memory_space<vmem>>, vector<1x1x32xf32>
    %137 = vector.shape_cast %136 : vector<1x1x32xf32> to vector<1x32xf32>
    %138 = vector.broadcast %137 : vector<1x32xf32> to vector<32x32xf32>
    %139 = arith.addf %135, %138 : vector<32x32xf32>
    %140 = arith.addf %139, %112 : vector<32x32xf32>
    %c0_77 = arith.constant 0 : index
    %c0_78 = arith.constant 0 : index
    %141 = vector.load %arg13[%c0_77, %c0_78] : memref<32x128xf32, #tpu.memory_space<vmem>>, vector<32x128xf32>
    %cst_79 = arith.constant dense<0.000000e+00> : vector<32x128xf32>
    %142 = tpu.matmul %140, %141, %cst_79 {dimension_numbers = #tpu.dot_dimension_numbers<[1], [0], [0], [1], [0, 0, 1, 1], [], []>} : vector<32x32xf32>, vector<32x128xf32>, vector<32x128xf32> -> vector<32x128xf32>
    %c0_80 = arith.constant 0 : index
    %c0_81 = arith.constant 0 : index
    %143 = vector.load %arg14[%c0_80, %c0_81] : memref<1x128xf32, #tpu.memory_space<vmem>>, vector<1x128xf32>
    %144 = vector.broadcast %143 : vector<1x128xf32> to vector<32x128xf32>
    %145 = arith.addf %142, %144 : vector<32x128xf32>
    %c0_82 = arith.constant 0 : index
    %c0_83 = arith.constant 0 : index
    %146 = vector.load %arg15[%c0_82, %c0_83] : memref<32x128xf32, #tpu.memory_space<vmem>>, vector<32x128xf32>
    tpu.vector_store %arg15[%c0_82, %c0_83], %145 {strides = array<i32>} : memref<32x128xf32, #tpu.memory_space<vmem>>, vector<32x128xf32>,
    return
  }
  func.func @transform_0(%arg0: i32) -> (i32, i32) {
    %c0_i32 = arith.constant 0 : i32
    %c0_i32_0 = arith.constant 0 : i32
    %c0_i32_1 = arith.constant 0 : i32
    return %c0_i32, %c0_i32_0 : i32, i32
  }
  func.func @transform_1(%arg0: i32) -> (i32, i32) {
    %c0_i32 = arith.constant 0 : i32
    %c0_i32_0 = arith.constant 0 : i32
    %c0_i32_1 = arith.constant 0 : i32
    return %c0_i32, %c0_i32_0 : i32, i32
  }
  func.func @transform_2(%arg0: i32) -> (i32, i32) {
    %c0_i32 = arith.constant 0 : i32
    %c0_i32_0 = arith.constant 0 : i32
    %c0_i32_1 = arith.constant 0 : i32
    return %c0_i32, %c0_i32_0 : i32, i32
  }
  func.func @transform_3(%arg0: i32) -> (i32, i32) {
    %c0_i32 = arith.constant 0 : i32
    %c0_i32_0 = arith.constant 0 : i32
    %c0_i32_1 = arith.constant 0 : i32
    return %c0_i32, %c0_i32_0 : i32, i32
  }
  func.func @transform_4(%arg0: i32) -> (i32, i32) {
    %c0_i32 = arith.constant 0 : i32
    %c0_i32_0 = arith.constant 0 : i32
    %c0_i32_1 = arith.constant 0 : i32
    return %c0_i32, %c0_i32_0 : i32, i32
  }
  func.func @transform_5(%arg0: i32) -> (i32, i32) {
    %c0_i32 = arith.constant 0 : i32
    %c0_i32_0 = arith.constant 0 : i32
    %c0_i32_1 = arith.constant 0 : i32
    return %c0_i32, %c0_i32_0 : i32, i32
  }
  func.func @transform_6(%arg0: i32) -> (i32, i32, i32) {
    %c0_i32 = arith.constant 0 : i32
    %c0_i32_0 = arith.constant 0 : i32
    %c0_i32_1 = arith.constant 0 : i32
    %c0_i32_2 = arith.constant 0 : i32
    return %c0_i32, %c0_i32_0, %c0_i32_1 : i32, i32, i32
  }
  func.func @transform_7(%arg0: i32) -> (i32, i32, i32) {
    %c0_i32 = arith.constant 0 : i32
    %c0_i32_0 = arith.constant 0 : i32
    %c0_i32_1 = arith.constant 0 : i32
    %c0_i32_2 = arith.constant 0 : i32
    return %c0_i32, %c0_i32_0, %c0_i32_1 : i32, i32, i32
  }
  func.func @transform_8(%arg0: i32) -> (i32, i32, i32) {
    %c0_i32 = arith.constant 0 : i32
    %c0_i32_0 = arith.constant 0 : i32
    %c0_i32_1 = arith.constant 0 : i32
    %c0_i32_2 = arith.constant 0 : i32
    return %c0_i32, %c0_i32_0, %c0_i32_1 : i32, i32, i32
  }
  func.func @transform_9(%arg0: i32) -> (i32, i32, i32) {
    %c0_i32 = arith.constant 0 : i32
    %c0_i32_0 = arith.constant 0 : i32
    %c0_i32_1 = arith.constant 0 : i32
    %c0_i32_2 = arith.constant 0 : i32
    return %c0_i32, %c0_i32_0, %c0_i32_1 : i32, i32, i32
  }
  func.func @transform_10(%arg0: i32) -> (i32, i32) {
    %c0_i32 = arith.constant 0 : i32
    %c0_i32_0 = arith.constant 0 : i32
    %c0_i32_1 = arith.constant 0 : i32
    return %c0_i32, %c0_i32_0 : i32, i32
  }
  func.func @transform_11(%arg0: i32) -> (i32, i32) {
    %c0_i32 = arith.constant 0 : i32
    %c0_i32_0 = arith.constant 0 : i32
    %c0_i32_1 = arith.constant 0 : i32
    return %c0_i32, %c0_i32_0 : i32, i32
  }
  func.func @transform_12(%arg0: i32) -> (i32, i32) {
    %c0_i32 = arith.constant 0 : i32
    %c0_i32_0 = arith.constant 0 : i32
    %c0_i32_1 = arith.constant 0 : i32
    return %c0_i32, %c0_i32_0 : i32, i32
  }
  func.func @transform_13(%arg0: i32) -> (i32, i32) {
    %c0_i32 = arith.constant 0 : i32
    %c0_i32_0 = arith.constant 0 : i32
    %c0_i32_1 = arith.constant 0 : i32
    return %c0_i32, %c0_i32_0 : i32, i32
  }
  func.func @transform_14(%arg0: i32) -> (i32, i32) {
    %c0_i32 = arith.constant 0 : i32
    %c0_i32_0 = arith.constant 0 : i32
    %c0_i32_1 = arith.constant 0 : i32
    return %c0_i32, %c0_i32_0 : i32, i32
  }
}

</mosaic_0001>

<bundles_post_ra>
// kernel: tpu_custom_call.1
= control target key start
LH: loop header
LB: loop body
LE: loop exit
PB: predicated region body
PF: predicated region fallthrough
CT: control target
= control target key end

     0   :  { %19 = vsyncpa [#allocation3], 0  ;;  %s3490_s0 = inlined_call_operand.vmem [shape: f32[32,1], index: 0, kind: input, shape index: {}]   ;;  %s3491_s1 = inlined_call_operand.vmem [shape: f32[32,16], index: 1, kind: input, shape index: {}]   ;;  %s3492_s2 = inlined_call_operand.vmem [shape: f32[32,32], index: 2, kind: input, shape index: {}]   ;;  %s3493_s3 = inlined_call_operand.hbm [shape: f32[1,64], index: 3, kind: input, shape index: {}]   ;;  %s3494_s4 = inlined_call_operand.hbm [shape: f32[1,32], index: 4, kind: input, shape index: {}]   ;;  %s3495_s5 = inlined_call_operand.hbm [shape: f32[1,32], index: 5, kind: input, shape index: {}]   ;;  %s3496_s6 = inlined_call_operand.hbm [shape: f32[4,32,64], index: 6, kind: input, shape index: {}]   ;;  %s3497_s7 = inlined_call_operand.hbm [shape: f32[4,32,64], index: 7, kind: input, shape index: {}]   ;;  %s3498_s8 = inlined_call_operand.hbm [shape: f32[4,1,32], index: 8, kind: input, shape index: {}]   ;;  %s3499_s9 = inlined_call_operand.hbm [shape: f32[4,1,32], index: 9, kind: input, shape index: {}]   ;;  %s3500_s10 = inlined_call_operand.vmem [shape: f32[16,320], index: 10, kind: input, shape index: {}]   ;;  %s3501_s11 = inlined_call_operand.vmem [shape: f32[1,320], index: 11, kind: input, shape index: {}]   ;;  %s3502_s12 = inlined_call_operand.vmem [shape: f32[32,128], index: 12, kind: input, shape index: {}]   ;;  %s3503_s13 = inlined_call_operand.vmem [shape: f32[1,128], index: 13, kind: input, shape index: {}]   ;;  %s3504_s14 = inlined_call_operand.hbm [shape: f32[32,128], index: 14, kind: output, shape index: {}]  }
   0x1   :  { %20 = vsyncpa [#allocation6], 0 }
   0x2   :  { %21 = vsyncpa [#allocation9], 0 }
   0x3   :  { %22 = vsyncpa [#allocation12], 0 }
   0x4   :  { %23 = vsyncpa [#allocation4], 0  ;;  %s2967_s29 = smov [#allocation5]   ;;  %s2968_s15 = smov [#allocation8]  }
   0x5   :  { %s46_s30 = sshll.u32 %s2967_s29, 4  ;;  %s65_s16 = sshll.u32 %s2968_s15, 4  ;;  %s47_s30 = int_to_ptr.vmem [resolvable:$true] %s46_s30  ;;  %s3058_s16 = int_to_ptr.vmem [resolvable:$true] %s65_s16 }
   0x6   :  { %s2781_s19 = scalar_lea.hbm %s3494_s4, 16 }
   0x7   :  { %p2782_p0 = scmp.ne.s32.totalorder %s3494_s4, %s2781_s19  ;;  %p2785_p1 = scmp.lt.u32.totalorder %s2781_s19, %s3494_s4 }
   0x9   :  { %p2787_p2 = pnand %p2785_p1, %p2782_p0 }
   0xb   :  { %2790 = shalt.err (!%p2787_p2)
}
   0xc   :  { %s2791_s24 = scalar_lea.vmem %s47_s30, 16  ;;  %s2795_s25 = scalar_lea.vmem %s47_s30, 32 }
   0xd   :  { %p2792_p3 = scmp.ne.s32.totalorder %s47_s30, %s2791_s24  ;;  %p2796_p4 = scmp.lt.s32.totalorder %s47_s30, %s47_s30 }
   0xe   :  { %p2797_p5 = scmp.lt.s32.totalorder %s2795_s25, %s2791_s24 }
  0x10   :  { %p2798_p6 = por %p2797_p5, %p2796_p4 }
  0x12   :  { %p2799_p7 = pnand %p2798_p6, %p2792_p3 }
  0x14   :  { %2802 = shalt.err (!%p2799_p7)
}
  0x15   :  { %49 = dma.hbm_to_vmem [thread:$0]  %s3494_s4, 16, %s47_s30, [#allocation6]  }
  0x16   :  { %s2803_s15 = scalar_lea.hbm %s3496_s6, 2048 }
  0x17   :  { %p2804_p8 = scmp.ne.s32.totalorder %s3496_s6, %s2803_s15  ;;  %p2807_p9 = scmp.lt.u32.totalorder %s2803_s15, %s3496_s6 }
  0x19   :  { %p2809_p10 = pnand %p2807_p9, %p2804_p8 }
  0x1b   :  { %2812 = shalt.err (!%p2809_p10)
}
  0x1c   :  { %s2813_s21 = scalar_lea.vmem %s3058_s16, 2048  ;;  %p2818_p12 = scmp.lt.s32.totalorder %s3058_s16, %s3058_s16 }
  0x1d   :  { %p2814_p11 = scmp.ne.s32.totalorder %s3058_s16, %s2813_s21  ;;  %p2819_p13 = scmp.lt.s32.totalorder %s2813_s21, %s2813_s21 }
  0x1f   :  { %p2820_p0 = por %p2819_p13, %p2818_p12 }
  0x21   :  { %p2821_p1 = pnand %p2820_p0, %p2814_p11 }
  0x23   :  { %2824 = shalt.err (!%p2821_p1)
}
  0x24   :  { %s2969_s4 = smov 128   ;;  %s2970_s30 = smov 8  }
  0x25   :  { %71 = dma.hbm_to_vmem [thread:$0]  %s3496_s6, 2048, %s3058_s16, [#allocation9], %s2969_s4, %s2969_s4, %s2970_s30  }
  0x26   :  { %s2971_s24 = smov [#allocation11]   ;;  %s2825_s28 = scalar_lea.hbm %s3498_s8, 64 }
  0x27   :  { %s89_s25 = sshll.u32 %s2971_s24, 4  ;;  %p2826_p2 = scmp.ne.s32.totalorder %s3498_s8, %s2825_s28  ;;  %s90_s25 = int_to_ptr.vmem [resolvable:$true] %s89_s25 }
  0x28   :  { %p2829_p3 = scmp.lt.u32.totalorder %s2825_s28, %s3498_s8 }
  0x2a   :  { %p2831_p4 = pnand %p2829_p3, %p2826_p2 }
  0x2c   :  { %2834 = shalt.err (!%p2831_p4)
}
  0x2d   :  { %s2835_s19 = scalar_lea.vmem %s90_s25, 64  ;;  %p2840_p6 = scmp.lt.s32.totalorder %s90_s25, %s90_s25 }
  0x2e   :  { %p2836_p5 = scmp.ne.s32.totalorder %s90_s25, %s2835_s19  ;;  %p2841_p7 = scmp.lt.s32.totalorder %s2835_s19, %s2835_s19 }
  0x30   :  { %p2842_p8 = por %p2841_p7, %p2840_p6 }
  0x32   :  { %p2843_p9 = pnand %p2842_p8, %p2836_p5 }
  0x34   :  { %2846 = shalt.err (!%p2843_p9)
}
  0x35   :  { %s2972_s6 = smov 16   ;;  %s2973_s16 = smov 1  }
  0x36   :  { %95 = dma.hbm_to_vmem [thread:$0]  %s3498_s8, 64, %s90_s25, [#allocation12], %s2972_s6, %s2972_s6, %s2973_s16  }
  0x37   :  { %s2974_s22 = smov [#allocation2]   ;;  %s2975_s24 = smov [#allocation7]  }
  0x38   :  { %s36_s23 = sshll.u32 %s2974_s22, 4  ;;  %s56_s26 = sshll.u32 %s2975_s24, 4  ;;  %s37_s23 = int_to_ptr.vmem [resolvable:$true] %s36_s23  ;;  %s57_s26 = int_to_ptr.vmem [resolvable:$true] %s56_s26 }
  0x39   :  { %s2847_s29 = scalar_lea.hbm %s3493_s3, 16 }
  0x3a   :  { %p2848_p10 = scmp.ne.s32.totalorder %s3493_s3, %s2847_s29  ;;  %p2851_p11 = scmp.lt.u32.totalorder %s2847_s29, %s3493_s3 }
  0x3c   :  { %p2853_p12 = pnand %p2851_p11, %p2848_p10 }
  0x3e   :  { %2856 = shalt.err (!%p2853_p12)
}
  0x3f   :  { %s2857_s8 = scalar_lea.vmem %s37_s23, 16  ;;  %s2861_s25 = scalar_lea.vmem %s37_s23, 32 }
  0x40   :  { %p2858_p13 = scmp.ne.s32.totalorder %s37_s23, %s2857_s8  ;;  %p2862_p0 = scmp.lt.s32.totalorder %s37_s23, %s37_s23 }
  0x41   :  { %p2863_p1 = scmp.lt.s32.totalorder %s2861_s25, %s2857_s8 }
  0x43   :  { %p2864_p2 = por %p2863_p1, %p2862_p0 }
  0x45   :  { %p2865_p3 = pnand %p2864_p2, %p2858_p13 }
  0x47   :  { %2868 = shalt.err (!%p2865_p3)
}
  0x48   :  { %39 = dma.hbm_to_vmem [thread:$0]  %s3493_s3, 16, %s37_s23, [#allocation3]  }
  0x49   :  { %s2869_s27 = scalar_lea.hbm %s3495_s5, 16 }
  0x4a   :  { %p2870_p4 = scmp.ne.s32.totalorder %s3495_s5, %s2869_s27  ;;  %p2873_p5 = scmp.lt.u32.totalorder %s2869_s27, %s3495_s5 }
  0x4c   :  { %p2875_p6 = pnand %p2873_p5, %p2870_p4 }
  0x4e   :  { %2878 = shalt.err (!%p2875_p6)
}
  0x4f   :  { %s2879_s18 = scalar_lea.vmem %s57_s26, 16  ;;  %s2883_s19 = scalar_lea.vmem %s57_s26, 32 }
  0x50   :  { %p2880_p7 = scmp.ne.s32.totalorder %s57_s26, %s2879_s18  ;;  %p2884_p8 = scmp.lt.s32.totalorder %s57_s26, %s57_s26 }
  0x51   :  { %p2885_p9 = scmp.lt.s32.totalorder %s2883_s19, %s2879_s18 }
  0x53   :  { %p2886_p10 = por %p2885_p9, %p2884_p8 }
  0x55   :  { %p2887_p11 = pnand %p2886_p10, %p2880_p7 }
  0x57   :  { %2890 = shalt.err (!%p2887_p11)
}
  0x58   :  { %59 = dma.hbm_to_vmem [thread:$0]  %s3495_s5, 16, %s57_s26, [#allocation6]  }
  0x59   :  { %s2976_s8 = smov [#allocation10]   ;;  %s2977_s20 = smov [#allocation13]  }
  0x5a   :  { %s77_s25 = sshll.u32 %s2976_s8, 4  ;;  %s101_s21 = sshll.u32 %s2977_s20, 4  ;;  %s78_s25 = int_to_ptr.vmem [resolvable:$true] %s77_s25  ;;  %s102_s21 = int_to_ptr.vmem [resolvable:$true] %s101_s21 }
  0x5b   :  { %s2891_s27 = scalar_lea.hbm %s3497_s7, 2048 }
  0x5c   :  { %p2892_p12 = scmp.ne.s32.totalorder %s3497_s7, %s2891_s27  ;;  %p2895_p13 = scmp.lt.u32.totalorder %s2891_s27, %s3497_s7 }
  0x5e   :  { %p2897_p0 = pnand %p2895_p13, %p2892_p12 }
  0x60   :  { %2900 = shalt.err (!%p2897_p0)
}
  0x61   :  { %s2901_s5 = scalar_lea.vmem %s78_s25, 2048  ;;  %p2906_p2 = scmp.lt.s32.totalorder %s78_s25, %s78_s25 }
  0x62   :  { %p2902_p1 = scmp.ne.s32.totalorder %s78_s25, %s2901_s5  ;;  %p2907_p3 = scmp.lt.s32.totalorder %s2901_s5, %s2901_s5 }
  0x64   :  { %p2908_p4 = por %p2907_p3, %p2906_p2 }
  0x66   :  { %p2909_p5 = pnand %p2908_p4, %p2902_p1 }
  0x68   :  { %2912 = shalt.err (!%p2909_p5)
}
  0x69   :  { %83 = dma.hbm_to_vmem [thread:$0]  %s3497_s7, 2048, %s78_s25, [#allocation9], %s2969_s4, %s2969_s4, %s2970_s30  }
  0x6a   :  { %s2913_s23 = scalar_lea.hbm %s3499_s9, 64 }
  0x6b   :  { %p2914_p6 = scmp.ne.s32.totalorder %s3499_s9, %s2913_s23  ;;  %p2917_p7 = scmp.lt.u32.totalorder %s2913_s23, %s3499_s9 }
  0x6d   :  { %p2919_p8 = pnand %p2917_p7, %p2914_p6 }
  0x6f   :  { %2922 = shalt.err (!%p2919_p8)
}
  0x70   :  { %s2923_s27 = scalar_lea.vmem %s102_s21, 64  ;;  %p2928_p10 = scmp.lt.s32.totalorder %s102_s21, %s102_s21 }
  0x71   :  { %p2924_p9 = scmp.ne.s32.totalorder %s102_s21, %s2923_s27  ;;  %p2929_p11 = scmp.lt.s32.totalorder %s2923_s27, %s2923_s27 }
  0x73   :  { %p2930_p12 = por %p2929_p11, %p2928_p10 }
  0x75   :  { %p2931_p13 = pnand %p2930_p12, %p2924_p9 }
  0x77   :  { %2934 = shalt.err (!%p2931_p13)
}
  0x78   :  { %107 = dma.hbm_to_vmem [thread:$0]  %s3499_s9, 64, %s102_s21, [#allocation12], %s2972_s6, %s2972_s6, %s2973_s16  }
  0x79   :  { %2957 = dma.done.wait [#allocation3], 16  }
  0x7a   :  { %2958 = vsyncadd [#allocation3], 4294967280 }
  0x7b   :  { %2959 = dma.done.wait [#allocation6], 32  }
  0x7c   :  { %2960 = vsyncadd [#allocation6], 4294967264 }
  0x7d   :  { %2961 = dma.done.wait [#allocation9], 4096  }
  0x7e   :  { %2962 = vsyncadd [#allocation9], 4294963200 }
  0x7f   :  { %2963 = dma.done.wait [#allocation12], 128  }
  0x80   :  { %2964 = vsyncadd [#allocation12], 4294967168  ;;  %v2978_v0 = vmov 0.0   ;;  %v2979_v1 = vmov 0   ;;  %v150_v2 = vld [vmem:[%s3500_s10 + $0x8] sm:$0xff]  ;;  %v153_v3 = vld [vmem:[%s3500_s10 + $0x20] sm:$0xff]  ;;  %v157_v16 = vlaneseq }
  0x81   :  { %249 = vmatprep.mubr.f32.mxu0 %v2978_v0  ;;  %2659 = vset.pattern.permute.xlu0 %v2979_v1  ;;  %v149_v4 = vld [vmem:[%s3500_s10] sm:$0xff]  ;;  %v2507_v5 = vpack.c.bf16 %v153_v3, %v150_v2  ;;  %v152_v6 = vld [vmem:[%s3500_s10 + $0x18] sm:$0xff]  ;;  %vm172_vm0 = vcmask 130048   ;;  %v139_v10 = vld [vmem:[%s3490_s0 + $0x10] sm:$0xff]  ;;  %s2980_s16 = smov 96   ;;  %vm464_vm1 = vcmask 261120  }
  0x82   :  { %2660 = vset.pattern.permute.xlu1 %v2979_v1  ;;  %v141_v7 = vld [vmem:[%s3491_s1] sm:$0xff]  ;;  %v2509_v8 = vpack.c.bf16 %v152_v6, %v149_v4  ;;  %v138_v11 = vld [vmem:[%s3490_s0 + $0x8] sm:$0xff]  ;;  %v140_v12 = vld [vmem:[%s3490_s0 + $0x18] sm:$0xff]  ;;  %v3211_v17 = vshrl.u32 %v157_v16, 7  ;;  %s2981_s5 = smov 64   ;;  %s2982_s29 = smov [#allocation14]  }
  0x83   :  { %v137_v9 = vld [vmem:[%s3490_s0] sm:$0xff]  ;;  %2319 = vmatprep.mubr.msk.f32.mxu1 %vm172_vm0, %v141_v7  ;;  %2508 = vmatprep.subr.bf16.mxu0 %v2507_v5  ;;  %v3193_v13 = vld [vmem:[%s3491_s1 + $0x8] sm:$0xff]  ;;  %v3200_v14 = vld [vmem:[%s3491_s1 + $0x10] sm:$0xff]  ;;  %s2098_s15 = sshll.u32 %s2982_s29, 4  ;;  %s2099_s15 = int_to_ptr.vmem [resolvable:$true] %s2098_s15 }
  0x84   :  { %362 = vperm.xlu0 %2659, %v137_v9   ;;  %2510 = vmatpush1.bf16.msra.mxu0 %v2509_v8  ;;  %v3207_v15 = vld [vmem:[%s3491_s1 + $0x18] sm:$0xff]  ;;  %v159_v18 = vsub.s32 0, %v3211_v17  ;;  %v3217_v19 = vld [vmem:[%s3501_s11] sm:$0x7]  ;;  %v567_v52 = vld [vmem:[#allocation10 + $0x8] sm:$0xff]  ;;  %s2935_s17 = scalar_lea.vmem %s2099_s15, 512  ;;  %p2940_p1 = scmp.lt.s32.totalorder %s2099_s15, %s2099_s15 }
  0x85   :  { %372 = vperm.xlu1 %2660, %v139_v10   ;;  %v2121_v21 = vld [vmem:[#allocation2] ss:$0 sm:$0xff]  ;;  %v566_v51 = vld [vmem:[#allocation10] sm:$0xff]  ;;  %v568_v56 = vld [vmem:[#allocation10 + $0x10] sm:$0xff]  ;;  %p2936_p0 = scmp.ne.s32.totalorder %s2099_s15, %s2935_s17  ;;  %p2941_p2 = scmp.lt.s32.totalorder %s2935_s17, %s2935_s17 }
  0x86   :  { %v160_v22 = vrot.slane %v3217_v19, %v159_v18  ;;  %v2523_v54 = vpack.c.bf16 %v567_v52, %v566_v51  ;;  %v569_v57 = vld [vmem:[#allocation10 + $0x18] sm:$0xff]  ;;  %v154_v61 = vld [vmem:[%s3500_s10 + $0x28] sm:$0xff]  ;;  %v3258_v6 = vld [vmem:[%s3492_s2] sm:$0xff] }
  0x87   :  { %2113 = vmatmul.mubr.msk.f32.vlgmr.msra.gmra.mrb[0].mxu0 %vm172_vm0, %v141_v7  ;;  %v2527_v59 = vpack.c.bf16 %v569_v57, %v568_v56  ;;  %v151_v60 = vld [vmem:[%s3500_s10 + $0x10] sm:$0xff]  ;;  %v562_v8 = vld [vmem:[#allocation8] sm:$0xff]  ;;  %v563_v9 = vld [vmem:[#allocation8 + $0x8] sm:$0xff]  ;;  %p2942_p3 = por %p2941_p2, %p2940_p1 }
  0x88   :  { %367 = vperm.xlu0 %2659, %v138_v11   ;;  %255 = vmatprep.mubr.f32.mxu0 %v2978_v0  ;;  %v2511_v62 = vpack.c.bf16 %v154_v61, %v151_v60  ;;  %v2531_v10 = vpack.c.bf16 %v563_v9, %v562_v8 }
  0x89   :  { %377 = vperm.xlu1 %2660, %v140_v12   ;;  %2524 = vmatprep.subr.bf16.mxu0 %v2523_v54  ;;  %v2126_v12 = vld [vmem:[#allocation5] ss:$0 sm:$0xff]  ;;  %p2943_p4 = pnand %p2942_p3, %p2936_p0 }
  0x8a   :  { %2526 = vmatpush3.bf16.msra.mxu0 %v2523_v54  ;;  %2512 = vmatprep.subr.bf16.mxu1 %v2511_v62 }
  0x8b   :  { %2114 = vmatmul.mubr.msk.f32.gmra.mrb[2].mxu0 %vm172_vm0, %v3193_v13  ;;  %2528 = vmatprep.subr.bf16.mxu0 %v2527_v59 }
  0x8c   :  { %261 = vmatprep.mubr.f32.mxu0 %v2978_v0  ;;  %2514 = vmatpush3.bf16.msra.mxu1 %v2511_v62 }
  0x8e   :  { %2530 = vmatpush3.bf16.msra.mxu0 %v2527_v59 }
  0x8f   :  { %2115 = vmatmul.mubr.msk.f32.gmra.mrb[4].mxu0 %vm172_vm0, %v3200_v14  ;;  %2320 = vmatmul.mubr.msk.f32.vlgmr.msra.gmra.mrb[0].mxu1 %vm172_vm0, %v3193_v13 }
  0x90   :  { %267 = vmatprep.mubr.f32.mxu0 %v2978_v0  ;;  %2322 = vmatprep.mubr.msk.f32.mxu1 %vm172_vm0, %v3200_v14 }
  0x91   :  { %2532 = vmatprep.subr.bf16.mxu0 %v2531_v10 }
  0x93   :  { %2116 = vmatmul.mubr.msk.f32.gmra.mrb[6].mxu0 %vm172_vm0, %v3207_v15  ;;  %2323 = vmatmul.mubr.msk.f32.gmra.mrb[2].mxu1 %vm172_vm0, %v3207_v15  ;;  %v2127_v15 = vld [vmem:[#allocation7] ss:$0 sm:$0xff] }
  0x94   :  { %2333 = vmatprep.mubr.msk.f32.mxu1 %vm464_vm1, %v3258_v6 }
 0x103   :  { %v363_v20 = vpop.permute.xlu0 %362 }
 0x104   :  { %v386_v23 = vmul.f32 %v2121_v21, %v363_v20  ;;  %v373_v31 = vpop.permute.xlu1 %372 }
 0x105   :  { %v388_v35 = vmul.f32 %v2121_v21, %v373_v31 }
 0x107   :  { %v368_v25 = vpop.permute.xlu0 %367 }
 0x108   :  { %v387_v29 = vmul.f32 %v2121_v21, %v368_v25  ;;  %v378_v41 = vpop.permute.xlu1 %377 }
 0x109   :  { %v389_v45 = vmul.f32 %v2121_v21, %v378_v41 }
 0x15a   :  { %v251_v24 = vpop.f32.mrb[0].mxu0 }
 0x15b   :  { %v3220_v26 = vadd.f32 %v251_v24, %v160_v22  ;;  %v3222_v27 = vpop.f32.mrb[1].mxu0  ;;  %v565_v24 = vld [vmem:[#allocation8 + $0x18] sm:$0xff] }
 0x15d   :  { %v3225_v28 = vadd.f32 %v386_v23, %v3220_v26  ;;  %v564_v23 = vld [vmem:[#allocation8 + $0x10] sm:$0xff] }
 0x15e   :  { %v257_v30 = vpop.f32.mrb[2].mxu0  ;;  %v2535_v31 = vpack.c.bf16 %v565_v24, %v564_v23 }
 0x15f   :  { %v2122_v32 = vmul.f32 -1.442695, %v3225_v28  ;;  %v3228_v33 = vadd.f32 %v257_v30, %v160_v22  ;;  %v3230_v34 = vpop.f32.mrb[3].mxu0 }
 0x161   :  { %2661 = vpow2.f32 %v2122_v32  ;;  %v3233_v36 = vadd.f32 %v387_v29, %v3228_v33 }
 0x162   :  { %v263_v37 = vpop.f32.mrb[4].mxu0 }
 0x163   :  { %v2123_v38 = vmul.f32 -1.442695, %v3233_v36  ;;  %v264_v39 = vadd.f32 %v263_v37, %v160_v22  ;;  %v3236_v40 = vpop.f32.mrb[5].mxu0 }
 0x165   :  { %2663 = vpow2.f32 %v2123_v38  ;;  %v392_v42 = vadd.f32 %v388_v35, %v264_v39 }
 0x166   :  { %v269_v43 = vpop.f32.mrb[6].mxu0 }
 0x167   :  { %v2124_v44 = vmul.f32 -1.442695, %v392_v42  ;;  %v270_v46 = vadd.f32 %v269_v43, %v160_v22  ;;  %v3238_v47 = vpop.f32.mrb[7].mxu0  ;;  %v3294_v43 = vld [vmem:[%s3492_s2 + $0x8] sm:$0xff] }
 0x169   :  { %2665 = vpow2.f32 %v2124_v44  ;;  %v393_v48 = vadd.f32 %v389_v45, %v270_v46  ;;  %v3299_v44 = vld [vmem:[%s3492_s2 + $0x10] sm:$0xff]  ;;  %v3308_v45 = vld [vmem:[%s3492_s2 + $0x18] sm:$0xff] }
 0x16b   :  { %v2662_v49 = vpop.eup %2661  ;;  %v2125_v50 = vmul.f32 -1.442695, %v393_v48 }
 0x16c   :  { %v410_v53 = vadd.f32 1.0, %v2662_v49 }
 0x16d   :  { %2667 = vpow2.f32 %v2125_v50 }
 0x16e   :  { %2669 = vrcp.f32 %v410_v53 }
 0x16f   :  { %v2664_v55 = vpop.eup %2663 }
 0x170   :  { %v411_v58 = vadd.f32 1.0, %v2664_v55 }
 0x172   :  { %2671 = vrcp.f32 %v411_v58 }
 0x173   :  { %v2666_v63 = vpop.eup %2665 }
 0x174   :  { %v412_v0 = vadd.f32 1.0, %v2666_v63 }
 0x176   :  { %2673 = vrcp.f32 %v412_v0 }
 0x177   :  { %v2668_v1 = vpop.eup %2667 }
 0x178   :  { %v2670_v2 = vpop.eup %2669  ;;  %v413_v3 = vadd.f32 1.0, %v2668_v1 }
 0x179   :  { %426 = vrot.lane.b32.xlu0 %v2670_v2, %s2980_s16 }
 0x17a   :  { %2675 = vrcp.f32 %v413_v3 }
 0x17b   :  { %2677 = vtanh.f32 %v3225_v28 }
 0x17c   :  { %v2672_v4 = vpop.eup %2671  ;;  %2679 = vtanh.f32 %v3233_v36 }
 0x17d   :  { %428 = vrot.lane.b32.xlu1 %v2672_v4, %s2980_s16  ;;  %2681 = vtanh.f32 %v392_v42 }
 0x17e   :  { %2683 = vtanh.f32 %v393_v48 }
 0x180   :  { %v2674_v5 = vpop.eup %2673 }
 0x181   :  { %430 = vrot.lane.b32.xlu0 %v2674_v5, %s2980_s16 }
 0x184   :  { %v2676_v7 = vpop.eup %2675 }
 0x185   :  { %768 = vrot.lane.b32.xlu0 %v3220_v26, %s2981_s5  ;;  %432 = vrot.lane.b32.xlu1 %v2676_v7, %s2980_s16  ;;  %v2678_v11 = vpop.eup %2677 }
 0x186   :  { %v2680_v18 = vpop.eup %2679 }
 0x187   :  { %v2682_v26 = vpop.eup %2681 }
 0x188   :  { %v2684_v35 = vpop.eup %2683 }
 0x189   :  { %772 = vrot.lane.b32.xlu0 %v264_v39, %s2981_s5  ;;  %770 = vrot.lane.b32.xlu1 %v3228_v33, %s2981_s5 }
 0x18d   :  { %774 = vrot.lane.b32.xlu1 %v270_v46, %s2981_s5 }
 0x1eb   :  { %v427_v13 = vpop.permute.xlu0 %426 }
 0x1ec   :  { %v438_v14 = vmul.f32 %v2678_v11, %v427_v13 }
 0x1ee   :  { %v449_v16 = vmul.f32 %v2126_v12, %v438_v14 }
 0x1ef   :  { %v429_v20 = vpop.permute.xlu1 %428 }
 0x1f0   :  { %v3271_v21 = vadd.f32 %v2127_v15, %v449_v16  ;;  %v439_v22 = vmul.f32 %v2680_v18, %v429_v20  ;;  %v2144_v18 = vld [vmem:[#allocation11] ss:$0 sm:$0xff] }
 0x1f2   :  { %v450_v25 = vmul.f32 %v2126_v12, %v439_v22  ;;  %2347 = vmatprep.mubr.msk.f32.mxu0 %vm464_vm1, %v3271_v21 }
 0x1f3   :  { %v431_v28 = vpop.permute.xlu0 %430 }
 0x1f4   :  { %v3275_v29 = vadd.f32 %v2127_v15, %v450_v25  ;;  %v440_v30 = vmul.f32 %v2682_v26, %v431_v28  ;;  %v2145_v25 = vld [vmem:[#allocation13] ss:$0 sm:$0xff] }
 0x1f6   :  { %v451_v32 = vmul.f32 %v2126_v12, %v440_v30  ;;  %2348 = vmatmul.mubr.msk.f32.vlgmr.msra.gmra.mrb[8].mxu0 %vm464_vm1, %v3275_v29  ;;  %v2515_v33 = vpack.c.bf16 %v3275_v29, %v3271_v21 }
 0x1f7   :  { %v433_v36 = vpop.permute.xlu1 %432  ;;  %2534 = vmatpush3.bf16.msra.mxu0 %v2531_v10  ;;  %v769_v52 = vpop.permute.xlu0 %768 }
 0x1f8   :  { %v3281_v37 = vadd.f32 %v2127_v15, %v451_v32  ;;  %v441_v38 = vmul.f32 %v2684_v35, %v433_v36  ;;  %2516 = vmatprep.subr.bf16.mxu1 %v2515_v33  ;;  %2536 = vmatprep.subr.bf16.mxu0 %v2535_v31 }
 0x1f9   :  { %2518 = vmatpush3.bf16.msra.mxu1 %v2515_v33 }
 0x1fa   :  { %v452_v39 = vmul.f32 %v2126_v12, %v441_v38  ;;  %2350 = vmatprep.mubr.msk.f32.mxu0 %vm464_vm1, %v3281_v37 }
 0x1fb   :  { %2538 = vmatpush3.bf16.msra.mxu0 %v2535_v31  ;;  %v771_v51 = vpop.permute.xlu1 %770  ;;  %v773_v61 = vpop.permute.xlu0 %772 }
 0x1fc   :  { %v3285_v41 = vadd.f32 %v2127_v15, %v452_v39 }
 0x1fe   :  { %2351 = vmatmul.mubr.msk.f32.gmra.mrb[10].mxu0 %vm464_vm1, %v3285_v41  ;;  %v2519_v42 = vpack.c.bf16 %v3285_v41, %v3281_v37 }
 0x1ff   :  { %v775_v58 = vpop.permute.xlu1 %774 }
 0x200   :  { %2520 = vmatprep.subr.bf16.mxu1 %v2519_v42 }
 0x201   :  { %2522 = vmatpush3.bf16.msra.mxu1 %v2519_v42 }
 0x204   :  { %2334 = vmatmul.mubr.msk.f32.vlgmr.msra.gmra.mrb[4].mxu1 %vm464_vm1, %v3294_v43 }
 0x205   :  { %2336 = vmatprep.mubr.msk.f32.mxu1 %vm464_vm1, %v3299_v44 }
 0x208   :  { %2337 = vmatmul.mubr.msk.f32.gmra.mrb[6].mxu1 %vm464_vm1, %v3308_v45 }
 0x209   :  { %2375 = vmatprep.mubr.msk.f32.mxu1 %vm464_vm1, %v3258_v6 }
 0x2d7   :  { %v2335_v46 = vpop.f32.mrb[4].mxu1 }
 0x2d8   :  { %v543_v48 = vpop.f32.mrb[5].mxu1 }
 0x2d9   :  { %2361 = vmatprep.mubr.msk.f32.mxu0 %vm464_vm1, %v543_v48 }
 0x2da   :  { %2362 = vmatmul.mubr.msk.f32.vlgmr.msra.gmra.mrb[8].mxu0 %vm464_vm1, %v2335_v46 }
 0x2db   :  { %v2338_v49 = vpop.f32.mrb[6].mxu1 }
 0x2dc   :  { %v553_v50 = vpop.f32.mrb[7].mxu1 }
 0x2dd   :  { %2364 = vmatprep.mubr.msk.f32.mxu0 %vm464_vm1, %v553_v50 }
 0x2de   :  { %2365 = vmatmul.mubr.msk.f32.gmra.mrb[10].mxu0 %vm464_vm1, %v2338_v49 }
 0x2df   :  { %2417 = vmatprep.mubr.msk.f32.mxu0 %vm464_vm1, %v3258_v6 }
 0x3ad   :  { %v2363_v53 = vpop.f32.mrb[8].mxu0 }
 0x3ae   :  { %v781_v54 = vadd.f32 %v2363_v53, %v771_v51  ;;  %v745_v55 = vpop.f32.mrb[9].mxu0 }
 0x3af   :  { %v780_v56 = vadd.f32 %v769_v52, %v745_v55  ;;  %v949_v55 = vld [vmem:[#allocation10 + $0x20] sm:$0xff] }
 0x3b0   :  { %v2141_v57 = vmul.f32 -1.442695, %v781_v54 }
 0x3b1   :  { %v2140_v59 = vmul.f32 -1.442695, %v780_v56  ;;  %v2366_v60 = vpop.f32.mrb[10].mxu0 }
 0x3b2   :  { %2685 = vpow2.f32 %v2141_v57  ;;  %v783_v62 = vadd.f32 %v2366_v60, %v775_v58  ;;  %v755_v63 = vpop.f32.mrb[11].mxu0  ;;  %v951_v58 = vld [vmem:[#allocation10 + $0x30] sm:$0xff] }
 0x3b3   :  { %2687 = vpow2.f32 %v2140_v59  ;;  %v782_v0 = vadd.f32 %v773_v61, %v755_v63  ;;  %v952_v59 = vld [vmem:[#allocation10 + $0x38] sm:$0xff]  ;;  %v944_v61 = vld [vmem:[#allocation8 + $0x20] sm:$0xff] }
 0x3b4   :  { %v2143_v1 = vmul.f32 -1.442695, %v783_v62  ;;  %v2551_v60 = vpack.c.bf16 %v952_v59, %v951_v58  ;;  %v947_v63 = vld [vmem:[#allocation8 + $0x38] sm:$0xff] }
 0x3b5   :  { %v2142_v2 = vmul.f32 -1.442695, %v782_v0 }
 0x3b6   :  { %2689 = vpow2.f32 %v2143_v1 }
 0x3b7   :  { %2691 = vpow2.f32 %v2142_v2 }
 0x3bc   :  { %v2686_v3 = vpop.eup %2685 }
 0x3bd   :  { %v2688_v4 = vpop.eup %2687  ;;  %v801_v5 = vadd.f32 1.0, %v2686_v3 }
 0x3be   :  { %v800_v7 = vadd.f32 1.0, %v2688_v4 }
 0x3bf   :  { %2693 = vrcp.f32 %v801_v5  ;;  %v163_v5 = vsub.s32 1, %v3211_v17 }
 0x3c0   :  { %v2690_v8 = vpop.eup %2689  ;;  %2695 = vrcp.f32 %v800_v7 }
 0x3c1   :  { %v2692_v9 = vpop.eup %2691  ;;  %v803_v10 = vadd.f32 1.0, %v2690_v8  ;;  %v164_v7 = vrot.slane %v3217_v19, %v163_v5 }
 0x3c2   :  { %v802_v11 = vadd.f32 1.0, %v2692_v9 }
 0x3c3   :  { %2697 = vrcp.f32 %v803_v10  ;;  %v260_v8 = vadd.f32 %v3230_v34, %v164_v7  ;;  %v254_v9 = vadd.f32 %v3222_v27, %v164_v7 }
 0x3c4   :  { %2699 = vrcp.f32 %v802_v11 }
 0x3c5   :  { %2701 = vtanh.f32 %v781_v54 }
 0x3c6   :  { %2703 = vtanh.f32 %v780_v56  ;;  %v950_v56 = vld [vmem:[#allocation10 + $0x28] sm:$0xff] }
 0x3c7   :  { %2705 = vtanh.f32 %v783_v62  ;;  %v946_v62 = vld [vmem:[#allocation8 + $0x30] sm:$0xff] }
 0x3c8   :  { %2707 = vtanh.f32 %v782_v0  ;;  %v2559_v0 = vpack.c.bf16 %v947_v63, %v946_v62 }
 0x3c9   :  { %v2694_v12 = vpop.eup %2693 }
 0x3ca   :  { %v2696_v13 = vpop.eup %2695  ;;  %818 = vrot.lane.b32.xlu1 %v2694_v12, %s2980_s16 }
 0x3cb   :  { %816 = vrot.lane.b32.xlu0 %v2696_v13, %s2980_s16 }
 0x3cd   :  { %v2698_v14 = vpop.eup %2697 }
 0x3ce   :  { %v2700_v15 = vpop.eup %2699  ;;  %822 = vrot.lane.b32.xlu1 %v2698_v14, %s2980_s16  ;;  %v272_v14 = vadd.f32 %v3238_v47, %v164_v7 }
 0x3cf   :  { %820 = vrot.lane.b32.xlu0 %v2700_v15, %s2980_s16  ;;  %v2702_v16 = vpop.eup %2701 }
 0x3d0   :  { %v2704_v22 = vpop.eup %2703 }
 0x3d1   :  { %v2706_v30 = vpop.eup %2705 }
 0x3d2   :  { %v2708_v33 = vpop.eup %2707 }
 0x43c   :  { %v819_v20 = vpop.permute.xlu1 %818 }
 0x43d   :  { %v829_v23 = vmul.f32 %v2702_v16, %v819_v20  ;;  %v817_v24 = vpop.permute.xlu0 %816  ;;  %v266_v16 = vadd.f32 %v3236_v40, %v164_v7  ;;  %v1318_v7 = vld [vmem:[#allocation10 + $0x40] sm:$0xff] }
 0x43e   :  { %v828_v26 = vmul.f32 %v2704_v22, %v817_v24 }
 0x43f   :  { %v840_v28 = vmul.f32 %v2144_v18, %v829_v23 }
 0x440   :  { %v839_v31 = vmul.f32 %v2144_v18, %v828_v26  ;;  %v823_v32 = vpop.permute.xlu1 %822 }
 0x441   :  { %v851_v35 = vadd.f32 %v2145_v25, %v840_v28  ;;  %v831_v36 = vmul.f32 %v2706_v30, %v823_v32  ;;  %v821_v38 = vpop.permute.xlu0 %820 }
 0x442   :  { %v850_v39 = vadd.f32 %v2145_v25, %v839_v31  ;;  %v830_v42 = vmul.f32 %v2708_v33, %v821_v38 }
 0x443   :  { %v3325_v46 = vadd.f32 %v851_v35, %v3275_v29  ;;  %v842_v48 = vmul.f32 %v2144_v18, %v831_v36  ;;  %v2547_v29 = vpack.c.bf16 %v950_v56, %v949_v55 }
 0x444   :  { %v3328_v49 = vadd.f32 %v850_v39, %v3271_v21  ;;  %v841_v50 = vmul.f32 %v2144_v18, %v830_v42  ;;  %v2162_v39 = vld [vmem:[#allocation11 + $0x1] ss:$0 sm:$0xff] }
 0x445   :  { %v853_v51 = vadd.f32 %v2145_v25, %v842_v48 }
 0x446   :  { %v852_v52 = vadd.f32 %v2145_v25, %v841_v50  ;;  %v2539_v53 = vpack.c.bf16 %v3325_v46, %v3328_v49 }
 0x447   :  { %v3333_v54 = vadd.f32 %v853_v51, %v3285_v41  ;;  %v945_v41 = vld [vmem:[#allocation8 + $0x28] sm:$0xff] }
 0x448   :  { %v3336_v57 = vadd.f32 %v852_v52, %v3281_v37  ;;  %2540 = vmatprep.subr.bf16.mxu1 %v2539_v53  ;;  %v2555_v37 = vpack.c.bf16 %v945_v41, %v944_v61  ;;  %v2163_v52 = vld [vmem:[#allocation13 + $0x1] ss:$0 sm:$0xff] }
 0x449   :  { %2542 = vmatpush3.bf16.msra.mxu1 %v2539_v53 }
 0x44a   :  { %v2543_v21 = vpack.c.bf16 %v3333_v54, %v3336_v57 }
 0x44c   :  { %2544 = vmatprep.subr.bf16.mxu1 %v2543_v21 }
 0x44d   :  { %2546 = vmatpush3.bf16.msra.mxu1 %v2543_v21 }
 0x44e   :  { %2548 = vmatprep.subr.bf16.mxu1 %v2547_v29 }
 0x450   :  { %2376 = vmatmul.mubr.msk.f32.vlgmr.msra.gmra.mrb[8].mxu1 %vm464_vm1, %v3294_v43 }
 0x451   :  { %2550 = vmatpush3.bf16.msra.mxu1 %v2547_v29  ;;  %2378 = vmatprep.mubr.msk.f32.mxu1 %vm464_vm1, %v3299_v44 }
 0x452   :  { %2552 = vmatprep.subr.bf16.mxu1 %v2551_v60 }
 0x454   :  { %2379 = vmatmul.mubr.msk.f32.gmra.mrb[10].mxu1 %vm464_vm1, %v3308_v45 }
 0x455   :  { %2554 = vmatpush3.bf16.msra.mxu1 %v2551_v60  ;;  %2389 = vmatprep.mubr.msk.f32.mxu1 %vm464_vm1, %v3328_v49 }
 0x456   :  { %2556 = vmatprep.subr.bf16.mxu1 %v2555_v37 }
 0x458   :  { %2390 = vmatmul.mubr.msk.f32.vlgmr.msra.gmra.mrb[12].mxu1 %vm464_vm1, %v3325_v46 }
 0x459   :  { %2392 = vmatprep.mubr.msk.f32.mxu1 %vm464_vm1, %v3336_v57  ;;  %2558 = vmatpush3.bf16.msra.mxu1 %v2555_v37 }
 0x45a   :  { %2560 = vmatprep.subr.bf16.mxu1 %v2559_v0 }
 0x45c   :  { %2393 = vmatmul.mubr.msk.f32.gmra.mrb[14].mxu1 %vm464_vm1, %v3333_v54 }
 0x45d   :  { %2562 = vmatpush3.bf16.msra.mxu1 %v2559_v0 }
 0x523   :  { %v2377_v1 = vpop.f32.mrb[8].mxu1 }
 0x524   :  { %v924_v2 = vpop.f32.mrb[9].mxu1 }
 0x525   :  { %2403 = vmatprep.mubr.msk.f32.mxu1 %vm464_vm1, %v924_v2 }
 0x526   :  { %2404 = vmatmul.mubr.msk.f32.vlgmr.msra.gmra.mrb[12].mxu1 %vm464_vm1, %v2377_v1 }
 0x527   :  { %v2380_v3 = vpop.f32.mrb[10].mxu1 }
 0x528   :  { %v934_v4 = vpop.f32.mrb[11].mxu1 }
 0x529   :  { %2406 = vmatprep.mubr.msk.f32.mxu1 %vm464_vm1, %v934_v4 }
 0x52a   :  { %2407 = vmatmul.mubr.msk.f32.gmra.mrb[14].mxu1 %vm464_vm1, %v2380_v3 }
 0x52b   :  { %2459 = vmatprep.mubr.msk.f32.mxu1 %vm464_vm1, %v3258_v6 }
 0x5f9   :  { %v2405_v10 = vpop.f32.mrb[12].mxu1 }
 0x5fa   :  { %v1148_v11 = vadd.f32 %v2405_v10, %v260_v8  ;;  %v1128_v12 = vpop.f32.mrb[13].mxu1  ;;  %v1320_v10 = vld [vmem:[#allocation10 + $0x50] sm:$0xff] }
 0x5fb   :  { %v1147_v13 = vadd.f32 %v1128_v12, %v254_v9 }
 0x5fc   :  { %v2159_v15 = vmul.f32 -1.442695, %v1148_v11 }
 0x5fd   :  { %v2158_v18 = vmul.f32 -1.442695, %v1147_v13  ;;  %v2408_v20 = vpop.f32.mrb[14].mxu1 }
 0x5fe   :  { %2709 = vpow2.f32 %v2159_v15  ;;  %v1150_v6 = vadd.f32 %v2408_v20, %v272_v14  ;;  %v1138_v22 = vpop.f32.mrb[15].mxu1  ;;  %v1316_v15 = vld [vmem:[#allocation8 + $0x58] sm:$0xff] }
 0x5ff   :  { %2711 = vpow2.f32 %v2158_v18  ;;  %v1149_v23 = vadd.f32 %v1138_v22, %v266_v16 }
 0x600   :  { %v2161_v24 = vmul.f32 -1.442695, %v1150_v6 }
 0x601   :  { %v2160_v34 = vmul.f32 -1.442695, %v1149_v23 }
 0x602   :  { %2713 = vpow2.f32 %v2161_v24 }
 0x603   :  { %2715 = vpow2.f32 %v2160_v34 }
 0x608   :  { %v2710_v27 = vpop.eup %2709 }
 0x609   :  { %v2712_v25 = vpop.eup %2711  ;;  %v1168_v26 = vadd.f32 1.0, %v2710_v27 }
 0x60a   :  { %v1167_v28 = vadd.f32 1.0, %v2712_v25 }
 0x60b   :  { %2717 = vrcp.f32 %v1168_v26 }
 0x60c   :  { %v2714_v47 = vpop.eup %2713  ;;  %2719 = vrcp.f32 %v1167_v28 }
 0x60d   :  { %v2716_v30 = vpop.eup %2715  ;;  %v1170_v40 = vadd.f32 1.0, %v2714_v47 }
 0x60e   :  { %v1169_v31 = vadd.f32 1.0, %v2716_v30 }
 0x60f   :  { %2721 = vrcp.f32 %v1170_v40 }
 0x610   :  { %2723 = vrcp.f32 %v1169_v31 }
 0x611   :  { %2725 = vtanh.f32 %v1148_v11  ;;  %v1321_v11 = vld [vmem:[#allocation10 + $0x58] sm:$0xff] }
 0x612   :  { %2727 = vtanh.f32 %v1147_v13  ;;  %v2575_v12 = vpack.c.bf16 %v1321_v11, %v1320_v10  ;;  %v1313_v13 = vld [vmem:[#allocation8 + $0x40] sm:$0xff] }
 0x613   :  { %2729 = vtanh.f32 %v1150_v6 }
 0x614   :  { %2731 = vtanh.f32 %v1149_v23 }
 0x615   :  { %v2718_v32 = vpop.eup %2717 }
 0x616   :  { %v2720_v33 = vpop.eup %2719  ;;  %1185 = vrot.lane.b32.xlu1 %v2718_v32, %s2980_s16 }
 0x617   :  { %1183 = vrot.lane.b32.xlu0 %v2720_v33, %s2980_s16 }
 0x619   :  { %v2722_v35 = vpop.eup %2721 }
 0x61a   :  { %v2724_v36 = vpop.eup %2723  ;;  %1189 = vrot.lane.b32.xlu1 %v2722_v35, %s2980_s16 }
 0x61b   :  { %1187 = vrot.lane.b32.xlu0 %v2724_v36, %s2980_s16  ;;  %v2726_v38 = vpop.eup %2725 }
 0x61c   :  { %v2728_v48 = vpop.eup %2727 }
 0x61d   :  { %v2730_v56 = vpop.eup %2729 }
 0x61e   :  { %1522 = vrot.lane.b32.xlu1 %v260_v8, %s2981_s5  ;;  %v2732_v58 = vpop.eup %2731  ;;  %v1319_v8 = vld [vmem:[#allocation10 + $0x48] sm:$0xff] }
 0x61f   :  { %1520 = vrot.lane.b32.xlu0 %v254_v9, %s2981_s5 }
 0x622   :  { %1526 = vrot.lane.b32.xlu1 %v272_v14, %s2981_s5  ;;  %v1315_v14 = vld [vmem:[#allocation8 + $0x50] sm:$0xff] }
 0x623   :  { %1524 = vrot.lane.b32.xlu0 %v266_v16, %s2981_s5  ;;  %v2583_v16 = vpack.c.bf16 %v1316_v15, %v1315_v14 }
 0x688   :  { %v1186_v42 = vpop.permute.xlu1 %1185 }
 0x689   :  { %v1196_v50 = vmul.f32 %v2726_v38, %v1186_v42  ;;  %v1184_v51 = vpop.permute.xlu0 %1183 }
 0x68a   :  { %v1195_v53 = vmul.f32 %v2728_v48, %v1184_v51 }
 0x68b   :  { %v1208_v55 = vmul.f32 %v2162_v39, %v1196_v50 }
 0x68c   :  { %v1207_v21 = vmul.f32 %v2162_v39, %v1195_v53  ;;  %v1190_v29 = vpop.permute.xlu1 %1189 }
 0x68d   :  { %v1220_v59 = vadd.f32 %v2163_v52, %v1208_v55  ;;  %v1198_v60 = vmul.f32 %v2730_v56, %v1190_v29  ;;  %v1188_v61 = vpop.permute.xlu0 %1187 }
 0x68e   :  { %v1219_v41 = vadd.f32 %v2163_v52, %v1207_v21  ;;  %v1197_v37 = vmul.f32 %v2732_v58, %v1188_v61 }
 0x68f   :  { %v3375_v62 = vadd.f32 %v1220_v59, %v3325_v46  ;;  %v1210_v63 = vmul.f32 %v2162_v39, %v1198_v60  ;;  %v2180_v60 = vld [vmem:[#allocation11 + $0x2] ss:$0 sm:$0xff] }
 0x690   :  { %v3378_v0 = vadd.f32 %v1219_v41, %v3328_v49  ;;  %v1209_v1 = vmul.f32 %v2162_v39, %v1197_v37  ;;  %v2571_v49 = vpack.c.bf16 %v1319_v8, %v1318_v7  ;;  %v1523_v23 = vpop.permute.xlu1 %1522 }
 0x691   :  { %v1222_v2 = vadd.f32 %v2163_v52, %v1210_v63  ;;  %v1521_v24 = vpop.permute.xlu0 %1520 }
 0x692   :  { %v1221_v3 = vadd.f32 %v2163_v52, %v1209_v1  ;;  %v2563_v4 = vpack.c.bf16 %v3375_v62, %v3378_v0  ;;  %v2181_v1 = vld [vmem:[#allocation13 + $0x2] ss:$0 sm:$0xff] }
 0x693   :  { %v3383_v5 = vadd.f32 %v1222_v2, %v3333_v54  ;;  %v1314_v54 = vld [vmem:[#allocation8 + $0x48] sm:$0xff] }
 0x694   :  { %v3386_v9 = vadd.f32 %v1221_v3, %v3336_v57  ;;  %2564 = vmatprep.subr.bf16.mxu0 %v2563_v4  ;;  %v2579_v57 = vpack.c.bf16 %v1314_v54, %v1313_v13  ;;  %v1527_v47 = vpop.permute.xlu1 %1526 }
 0x695   :  { %2566 = vmatpush3.bf16.msra.mxu0 %v2563_v4  ;;  %v1525_v31 = vpop.permute.xlu0 %1524 }
 0x696   :  { %v2567_v46 = vpack.c.bf16 %v3383_v5, %v3386_v9 }
 0x698   :  { %2568 = vmatprep.subr.bf16.mxu0 %v2567_v46 }
 0x699   :  { %2570 = vmatpush3.bf16.msra.mxu0 %v2567_v46 }
 0x69a   :  { %2572 = vmatprep.subr.bf16.mxu0 %v2571_v49 }
 0x69c   :  { %2418 = vmatmul.mubr.msk.f32.vlgmr.msra.gmra.mrb[12].mxu0 %vm464_vm1, %v3294_v43 }
 0x69d   :  { %2574 = vmatpush3.bf16.msra.mxu0 %v2571_v49  ;;  %2420 = vmatprep.mubr.msk.f32.mxu0 %vm464_vm1, %v3299_v44 }
 0x69e   :  { %2576 = vmatprep.subr.bf16.mxu0 %v2575_v12 }
 0x6a0   :  { %2421 = vmatmul.mubr.msk.f32.gmra.mrb[14].mxu0 %vm464_vm1, %v3308_v45 }
 0x6a1   :  { %2578 = vmatpush3.bf16.msra.mxu0 %v2575_v12  ;;  %2431 = vmatprep.mubr.msk.f32.mxu0 %vm464_vm1, %v3378_v0 }
 0x6a2   :  { %2580 = vmatprep.subr.bf16.mxu0 %v2579_v57 }
 0x6a4   :  { %2432 = vmatmul.mubr.msk.f32.vlgmr.msra.gmra.mrb[16].mxu0 %vm464_vm1, %v3375_v62 }
 0x6a5   :  { %2434 = vmatprep.mubr.msk.f32.mxu0 %vm464_vm1, %v3386_v9  ;;  %2582 = vmatpush3.bf16.msra.mxu0 %v2579_v57 }
 0x6a6   :  { %2584 = vmatprep.subr.bf16.mxu0 %v2583_v16 }
 0x6a8   :  { %2435 = vmatmul.mubr.msk.f32.gmra.mrb[18].mxu0 %vm464_vm1, %v3383_v5 }
 0x6a9   :  { %2586 = vmatpush3.bf16.msra.mxu0 %v2583_v16 }
 0x76f   :  { %v2419_v18 = vpop.f32.mrb[12].mxu0 }
 0x770   :  { %v1293_v20 = vpop.f32.mrb[13].mxu0 }
 0x771   :  { %2445 = vmatprep.mubr.msk.f32.mxu0 %vm464_vm1, %v1293_v20 }
 0x772   :  { %2446 = vmatmul.mubr.msk.f32.vlgmr.msra.gmra.mrb[16].mxu0 %vm464_vm1, %v2419_v18 }
 0x773   :  { %v2422_v6 = vpop.f32.mrb[14].mxu0 }
 0x774   :  { %v1303_v22 = vpop.f32.mrb[15].mxu0 }
 0x775   :  { %2448 = vmatprep.mubr.msk.f32.mxu0 %vm464_vm1, %v1303_v22  ;;  %v1703_v22 = vld [vmem:[#allocation10 + $0x60] sm:$0xff] }
 0x776   :  { %2449 = vmatmul.mubr.msk.f32.gmra.mrb[18].mxu0 %vm464_vm1, %v2422_v6 }
 0x845   :  { %v2447_v34 = vpop.f32.mrb[16].mxu0 }
 0x846   :  { %v1533_v27 = vadd.f32 %v2447_v34, %v1523_v23  ;;  %v1497_v25 = vpop.f32.mrb[17].mxu0  ;;  %v1704_v23 = vld [vmem:[#allocation10 + $0x68] sm:$0xff]  ;;  %v1705_v34 = vld [vmem:[#allocation10 + $0x70] sm:$0xff] }
 0x847   :  { %v1532_v26 = vadd.f32 %v1521_v24, %v1497_v25 }
 0x848   :  { %v2177_v28 = vmul.f32 -1.442695, %v1533_v27 }
 0x849   :  { %v2176_v30 = vmul.f32 -1.442695, %v1532_v26  ;;  %v2450_v40 = vpop.f32.mrb[18].mxu0 }
 0x84a   :  { %2733 = vpow2.f32 %v2177_v28  ;;  %v1535_v32 = vadd.f32 %v2450_v40, %v1527_v47  ;;  %v1507_v33 = vpop.f32.mrb[19].mxu0  ;;  %v1700_v28 = vld [vmem:[#allocation8 + $0x70] sm:$0xff]  ;;  %v1701_v47 = vld [vmem:[#allocation8 + $0x78] sm:$0xff] }
 0x84b   :  { %2735 = vpow2.f32 %v2176_v30  ;;  %v1534_v35 = vadd.f32 %v1525_v31, %v1507_v33  ;;  %v2607_v30 = vpack.c.bf16 %v1701_v47, %v1700_v28  ;;  %v167_v31 = vsub.s32 2, %v3211_v17  ;;  %v1981_v17 = vld [vmem:[%s3502_s12] sm:$0xff] }
 0x84c   :  { %v2179_v36 = vmul.f32 -1.442695, %v1535_v32 }
 0x84d   :  { %v2178_v38 = vmul.f32 -1.442695, %v1534_v35 }
 0x84e   :  { %2737 = vpow2.f32 %v2179_v36 }
 0x84f   :  { %2739 = vpow2.f32 %v2178_v38 }
 0x854   :  { %v2734_v39 = vpop.eup %2733 }
 0x855   :  { %v2736_v42 = vpop.eup %2735  ;;  %v1553_v48 = vadd.f32 1.0, %v2734_v39 }
 0x856   :  { %v1552_v50 = vadd.f32 1.0, %v2736_v42 }
 0x857   :  { %2741 = vrcp.f32 %v1553_v48 }
 0x858   :  { %v2738_v51 = vpop.eup %2737  ;;  %2743 = vrcp.f32 %v1552_v50 }
 0x859   :  { %v2740_v52 = vpop.eup %2739  ;;  %v1555_v53 = vadd.f32 1.0, %v2738_v51 }
 0x85a   :  { %v1554_v55 = vadd.f32 1.0, %v2740_v52 }
 0x85b   :  { %2745 = vrcp.f32 %v1555_v53 }
 0x85c   :  { %2747 = vrcp.f32 %v1554_v55 }
 0x85d   :  { %2749 = vtanh.f32 %v1533_v27  ;;  %v1706_v27 = vld [vmem:[#allocation10 + $0x78] sm:$0xff] }
 0x85e   :  { %2751 = vtanh.f32 %v1532_v26  ;;  %v2599_v25 = vpack.c.bf16 %v1706_v27, %v1705_v34  ;;  %v1698_v26 = vld [vmem:[#allocation8 + $0x60] sm:$0xff] }
 0x85f   :  { %2753 = vtanh.f32 %v1535_v32  ;;  %v168_v32 = vrot.slane %v3217_v19, %v167_v31  ;;  %v1982_v19 = vld [vmem:[%s3502_s12 + $0x8] sm:$0xff] }
 0x860   :  { %2755 = vtanh.f32 %v1534_v35 }
 0x861   :  { %v2742_v56 = vpop.eup %2741 }
 0x862   :  { %v2744_v21 = vpop.eup %2743  ;;  %1570 = vrot.lane.b32.xlu1 %v2742_v56, %s2980_s16 }
 0x863   :  { %1568 = vrot.lane.b32.xlu0 %v2744_v21, %s2980_s16 }
 0x865   :  { %v2746_v29 = vpop.eup %2745 }
 0x866   :  { %v2748_v58 = vpop.eup %2747  ;;  %1574 = vrot.lane.b32.xlu1 %v2746_v29, %s2980_s16 }
 0x867   :  { %1572 = vrot.lane.b32.xlu0 %v2748_v58, %s2980_s16  ;;  %v2750_v59 = vpop.eup %2749  ;;  %v2611_v58 = vpack.c.bf16 %v1982_v19, %v1981_v17 }
 0x868   :  { %v2752_v41 = vpop.eup %2751 }
 0x869   :  { %v2754_v4 = vpop.eup %2753  ;;  %2612 = vmatprep.subr.bf16.mxu0 %v2611_v58 }
 0x86a   :  { %v2756_v46 = vpop.eup %2755  ;;  %2614 = vmatpush3.bf16.msra.mxu0 %v2611_v58 }
 0x8d4   :  { %v1571_v61 = vpop.permute.xlu1 %1570 }
 0x8d5   :  { %v1581_v37 = vmul.f32 %v2750_v59, %v1571_v61  ;;  %v1569_v63 = vpop.permute.xlu0 %1568  ;;  %v1983_v61 = vld [vmem:[%s3502_s12 + $0x10] sm:$0xff] }
 0x8d6   :  { %v1580_v2 = vmul.f32 %v2752_v41, %v1569_v63  ;;  %v1984_v41 = vld [vmem:[%s3502_s12 + $0x18] sm:$0xff] }
 0x8d7   :  { %v1593_v3 = vmul.f32 %v2180_v60, %v1581_v37 }
 0x8d8   :  { %v1592_v7 = vmul.f32 %v2180_v60, %v1580_v2  ;;  %v1575_v8 = vpop.permute.xlu1 %1574 }
 0x8d9   :  { %v1605_v49 = vadd.f32 %v2181_v1, %v1593_v3  ;;  %v1583_v10 = vmul.f32 %v2754_v4, %v1575_v8  ;;  %v1573_v11 = vpop.permute.xlu0 %1572 }
 0x8da   :  { %v1604_v12 = vadd.f32 %v2181_v1, %v1592_v7  ;;  %v1582_v13 = vmul.f32 %v2756_v46, %v1573_v11 }
 0x8db   :  { %v3413_v54 = vadd.f32 %v1605_v49, %v3375_v62  ;;  %v1595_v57 = vmul.f32 %v2180_v60, %v1583_v10  ;;  %v2198_v49 = vld [vmem:[#allocation11 + $0x3] ss:$0 sm:$0xff] }
 0x8dc   :  { %v3416_v14 = vadd.f32 %v1604_v12, %v3378_v0  ;;  %v1594_v15 = vmul.f32 %v2180_v60, %v1582_v13  ;;  %v2595_v0 = vpack.c.bf16 %v1704_v23, %v1703_v22 }
 0x8dd   :  { %v1607_v16 = vadd.f32 %v2181_v1, %v1595_v57  ;;  %v2199_v57 = vld [vmem:[#allocation13 + $0x3] ss:$0 sm:$0xff] }
 0x8de   :  { %v1606_v18 = vadd.f32 %v2181_v1, %v1594_v15  ;;  %v2587_v20 = vpack.c.bf16 %v3413_v54, %v3416_v14  ;;  %v2615_v1 = vpack.c.bf16 %v1984_v41, %v1983_v61 }
 0x8df   :  { %v3421_v6 = vadd.f32 %v1607_v16, %v3383_v5  ;;  %v1699_v5 = vld [vmem:[#allocation8 + $0x68] sm:$0xff] }
 0x8e0   :  { %v3424_v24 = vadd.f32 %v1606_v18, %v3386_v9  ;;  %2588 = vmatprep.subr.bf16.mxu1 %v2587_v20  ;;  %v2603_v9 = vpack.c.bf16 %v1699_v5, %v1698_v26  ;;  %2616 = vmatprep.subr.bf16.mxu0 %v2615_v1 }
 0x8e1   :  { %2590 = vmatpush3.bf16.msra.mxu1 %v2587_v20  ;;  %2618 = vmatpush3.bf16.msra.mxu0 %v2615_v1 }
 0x8e2   :  { %v2591_v62 = vpack.c.bf16 %v3421_v6, %v3424_v24 }
 0x8e4   :  { %2592 = vmatprep.subr.bf16.mxu1 %v2591_v62 }
 0x8e5   :  { %2594 = vmatpush3.bf16.msra.mxu1 %v2591_v62 }
 0x8e6   :  { %2596 = vmatprep.subr.bf16.mxu1 %v2595_v0 }
 0x8e8   :  { %2460 = vmatmul.mubr.msk.f32.vlgmr.msra.gmra.mrb[16].mxu1 %vm464_vm1, %v3294_v43 }
 0x8e9   :  { %2598 = vmatpush3.bf16.msra.mxu1 %v2595_v0  ;;  %2462 = vmatprep.mubr.msk.f32.mxu1 %vm464_vm1, %v3299_v44 }
 0x8ea   :  { %2600 = vmatprep.subr.bf16.mxu1 %v2599_v25 }
 0x8ec   :  { %2463 = vmatmul.mubr.msk.f32.gmra.mrb[18].mxu1 %vm464_vm1, %v3308_v45 }
 0x8ed   :  { %2602 = vmatpush3.bf16.msra.mxu1 %v2599_v25  ;;  %2473 = vmatprep.mubr.msk.f32.mxu1 %vm464_vm1, %v3416_v14 }
 0x8ee   :  { %2604 = vmatprep.subr.bf16.mxu1 %v2603_v9 }
 0x8f0   :  { %2474 = vmatmul.mubr.msk.f32.vlgmr.msra.gmra.mrb[0].mxu1 %vm464_vm1, %v3413_v54 }
 0x8f1   :  { %2476 = vmatprep.mubr.msk.f32.mxu1 %vm464_vm1, %v3424_v24  ;;  %2606 = vmatpush3.bf16.msra.mxu1 %v2603_v9 }
 0x8f2   :  { %2608 = vmatprep.subr.bf16.mxu1 %v2607_v30 }
 0x8f4   :  { %2477 = vmatmul.mubr.msk.f32.gmra.mrb[2].mxu1 %vm464_vm1, %v3421_v6 }
 0x8f5   :  { %2610 = vmatpush3.bf16.msra.mxu1 %v2607_v30 }
 0x9bb   :  { %v2461_v43 = vpop.f32.mrb[16].mxu1 }
 0x9bc   :  { %v1678_v44 = vpop.f32.mrb[17].mxu1 }
 0x9bd   :  { %2487 = vmatprep.mubr.msk.f32.mxu1 %vm464_vm1, %v1678_v44 }
 0x9be   :  { %2488 = vmatmul.mubr.msk.f32.vlgmr.msra.gmra.mrb[0].mxu1 %vm464_vm1, %v2461_v43 }
 0x9bf   :  { %v2464_v45 = vpop.f32.mrb[18].mxu1 }
 0x9c0   :  { %v1688_v40 = vpop.f32.mrb[19].mxu1 }
 0x9c1   :  { %2490 = vmatprep.mubr.msk.f32.mxu1 %vm464_vm1, %v1688_v40 }
 0x9c2   :  { %2491 = vmatmul.mubr.msk.f32.gmra.mrb[2].mxu1 %vm464_vm1, %v2464_v45 }
 0xa91   :  { %v2489_v33 = vpop.f32.mrb[0].mxu1 }
 0xa92   :  { %v2619_v35 = vadd.f32 %v2489_v33, %v168_v32  ;;  %v1882_v36 = vpop.f32.mrb[1].mxu1 }
 0xa93   :  { %v2620_v38 = vadd.f32 %v1882_v36, %v168_v32 }
 0xa94   :  { %v2195_v39 = vmul.f32 -1.442695, %v2619_v35 }
 0xa95   :  { %v2194_v42 = vmul.f32 -1.442695, %v2620_v38  ;;  %v2492_v48 = vpop.f32.mrb[2].mxu1 }
 0xa96   :  { %2757 = vpow2.f32 %v2195_v39  ;;  %v2621_v50 = vadd.f32 %v2492_v48, %v168_v32  ;;  %v1892_v51 = vpop.f32.mrb[3].mxu1 }
 0xa97   :  { %2759 = vpow2.f32 %v2194_v42  ;;  %v2622_v52 = vadd.f32 %v1892_v51, %v168_v32 }
 0xa98   :  { %v2197_v53 = vmul.f32 -1.442695, %v2621_v50 }
 0xa99   :  { %v2196_v55 = vmul.f32 -1.442695, %v2622_v52 }
 0xa9a   :  { %2761 = vpow2.f32 %v2197_v53 }
 0xa9b   :  { %2763 = vpow2.f32 %v2196_v55 }
 0xaa0   :  { %v2758_v56 = vpop.eup %2757 }
 0xaa1   :  { %v2760_v21 = vpop.eup %2759  ;;  %v1922_v29 = vadd.f32 1.0, %v2758_v56 }
 0xaa2   :  { %v1921_v59 = vadd.f32 1.0, %v2760_v21 }
 0xaa3   :  { %2765 = vrcp.f32 %v1922_v29 }
 0xaa4   :  { %v2762_v60 = vpop.eup %2761  ;;  %2767 = vrcp.f32 %v1921_v59 }
 0xaa5   :  { %v2764_v37 = vpop.eup %2763  ;;  %v1924_v63 = vadd.f32 1.0, %v2762_v60 }
 0xaa6   :  { %v1923_v2 = vadd.f32 1.0, %v2764_v37 }
 0xaa7   :  { %2769 = vrcp.f32 %v1924_v63 }
 0xaa8   :  { %2771 = vrcp.f32 %v1923_v2 }
 0xaa9   :  { %2773 = vtanh.f32 %v2619_v35 }
 0xaaa   :  { %2775 = vtanh.f32 %v2620_v38 }
 0xaab   :  { %2777 = vtanh.f32 %v2621_v50 }
 0xaac   :  { %2779 = vtanh.f32 %v2622_v52 }
 0xaad   :  { %v2766_v3 = vpop.eup %2765 }
 0xaae   :  { %v2768_v4 = vpop.eup %2767  ;;  %1939 = vrot.lane.b32.xlu1 %v2766_v3, %s2980_s16 }
 0xaaf   :  { %1937 = vrot.lane.b32.xlu0 %v2768_v4, %s2980_s16 }
 0xab1   :  { %v2770_v7 = vpop.eup %2769 }
 0xab2   :  { %v2772_v8 = vpop.eup %2771  ;;  %1943 = vrot.lane.b32.xlu1 %v2770_v7, %s2980_s16 }
 0xab3   :  { %1941 = vrot.lane.b32.xlu0 %v2772_v8, %s2980_s16  ;;  %v2774_v46 = vpop.eup %2773 }
 0xab4   :  { %v2776_v11 = vpop.eup %2775 }
 0xab5   :  { %v2778_v18 = vpop.eup %2777 }
 0xab6   :  { %v2780_v23 = vpop.eup %2779 }
 0xb20   :  { %v1940_v10 = vpop.permute.xlu1 %1939 }
 0xb21   :  { %v1950_v12 = vmul.f32 %v2774_v46, %v1940_v10  ;;  %v1938_v13 = vpop.permute.xlu0 %1937 }
 0xb22   :  { %v1949_v15 = vmul.f32 %v2776_v11, %v1938_v13 }
 0xb23   :  { %v1962_v16 = vmul.f32 %v2198_v49, %v1950_v12 }
 0xb24   :  { %v1961_v20 = vmul.f32 %v2198_v49, %v1949_v15  ;;  %v1944_v22 = vpop.permute.xlu1 %1943 }
 0xb25   :  { %v1974_v62 = vadd.f32 %v2199_v57, %v1962_v16  ;;  %v1952_v0 = vmul.f32 %v2778_v18, %v1944_v22  ;;  %v1942_v34 = vpop.permute.xlu0 %1941 }
 0xb26   :  { %v1973_v27 = vadd.f32 %v2199_v57, %v1961_v20  ;;  %v1951_v25 = vmul.f32 %v2780_v23, %v1942_v34 }
 0xb27   :  { %v1964_v26 = vmul.f32 %v2198_v49, %v1952_v0  ;;  %v1978_v28 = vadd.f32 %v1974_v62, %v3413_v54 }
 0xb28   :  { %v1977_v5 = vadd.f32 %v1973_v27, %v3416_v14  ;;  %v1963_v9 = vmul.f32 %v2198_v49, %v1951_v25  ;;  %v2200_v14 = vld [vmem:[%s3503_s13] ss:$0 sm:$0xff] }
 0xb29   :  { %v1976_v47 = vadd.f32 %v2199_v57, %v1964_v26 }
 0xb2a   :  { %v1975_v30 = vadd.f32 %v2199_v57, %v1963_v9  ;;  %2501 = vmatprep.mubr.msk.f32.mxu0 %vm464_vm1, %v1977_v5 }
 0xb2b   :  { %2502 = vmatmul.mubr.msk.f32.vlgmr.msra.gmra.mrb[20].mxu0 %vm464_vm1, %v1978_v28  ;;  %v1980_v44 = vadd.f32 %v1976_v47, %v3421_v6 }
 0xb2c   :  { %v1979_v43 = vadd.f32 %v1975_v30, %v3424_v24 }
 0xb2e   :  { %2504 = vmatprep.mubr.msk.f32.mxu0 %vm464_vm1, %v1979_v43 }
 0xb2f   :  { %2505 = vmatmul.mubr.msk.f32.gmra.mrb[22].mxu0 %vm464_vm1, %v1980_v44 }
 0xbfe   :  { %v2503_v45 = vpop.f32.mrb[20].mxu0 }
 0xbff   :  { %v2076_v54 = vadd.f32 %v2503_v45, %v2200_v14  ;;  %v2070_v40 = vpop.f32.mrb[21].mxu0 }
 0xc00   :  { %v2071_v31 = vadd.f32 %v2200_v14, %v2070_v40 }
 0xc01   :  { %2090 = vst [vmem:[#allocation14 + $0x8] sm:$0xff] %v2076_v54 }
 0xc02   :  { %2089 = vst [vmem:[#allocation14] sm:$0xff] %v2071_v31  ;;  %v2506_v32 = vpop.f32.mrb[22].mxu0 }
 0xc03   :  { %v2086_v24 = vadd.f32 %v2506_v32, %v2200_v14  ;;  %v2080_v33 = vpop.f32.mrb[23].mxu0 }
 0xc04   :  { %v2081_v6 = vadd.f32 %v2200_v14, %v2080_v33 }
 0xc05   :  { %2092 = vst [vmem:[#allocation14 + $0x18] sm:$0xff] %v2086_v24 }
 0xc06   :  { %2091 = vst [vmem:[#allocation14 + $0x10] sm:$0xff] %v2081_v6 }
 0xc07   :  { %2946 = shalt.err (!%p2943_p4)
}
 0xc08   :  { %s2947_s11 = scalar_lea.hbm %s3504_s14, 512 }
 0xc09   :  { %p2948_p5 = scmp.ne.s32.totalorder %s3504_s14, %s2947_s11  ;;  %p2951_p6 = scmp.lt.u32.totalorder %s2947_s11, %s3504_s14 }
 0xc0b   :  { %p2953_p7 = pnand %p2951_p6, %p2948_p5 }
 0xc0d   :  { %2956 = shalt.err (!%p2953_p7)
}
 0xc0e   :  { %2104 = dma.vmem_to_hbm [thread:$0]  %s2099_s15, 512, %s3504_s14, [#allocation4], %s2969_s4, %s2969_s4, %s2970_s30  }
 0xc0f   :  { %2965 = dma.done.wait [#allocation4], 512  }
 0xc10   :  { %2966 = vsyncadd [#allocation4], 4294966784 }
 0xc11   :  { %2108 = vsyncpa [#allocation3], 1 }
 0xc12   :  { %2109 = vsyncpa [#allocation6], 1 }
 0xc13   :  { %2110 = vsyncpa [#allocation9], 1 }
 0xc14   :  { %2111 = vsyncpa [#allocation12], 1 }
 0xc15   :  { %2112 = vsyncpa [#allocation4], 1 }

</bundles_post_ra>
